<compile_context>
chip_gen: v6e
topology: v6e:2x2x1
jax: 0.10.0
libtpu: 0.0.40
codegen_flags: <defaults>
</compile_context>

<pallas_src>
import jax
import jax.numpy as jnp
from jax.experimental import pallas as pl
from jax.experimental.pallas import tpu as pltpu

# ---------------- problem sizes (synthetic, small) ----------------
N = 16            # number of nodes
C = 4             # multiplicity of 0e in irreps_input / irreps_output ("4x0e")
E = 256           # number of edges
F0 = 8            # fc_neurons[0] (edge_type feature dim)
H = 16            # fc hidden width; fc_neurons = [F0, H]
C2 = C * C        # tp.irreps_out dim ("16x0e")
WN = C * C2 * C   # tp2.weight_numel for the single uvw path = 256
NUM_NEIGHBORS = float(E) / float(N)

# Edge-tiling: leading "parallel" split (2 TensorCores on v7x), inner "arbitrary" tiles.
NUM_SPLITS = 2
MAX_TE = 512


def _tiling(num_edges):
    per_split = -(-num_edges // NUM_SPLITS)
    te = min(per_split, MAX_TE)
    te = max(8, ((te + 7) // 8) * 8)          # sublane-aligned
    tiles = -(-per_split // te)
    return te, tiles, NUM_SPLITS * tiles * te


TE, TILES_PER_SPLIT, E_PAD = _tiling(E)       # E=256 -> TE=128, 1 tile/split, E_PAD=256


def _silu_norm_const() -> float:
    # e3nn normalize2mom(silu): scale act so that E_{z~N(0,1)}[act(z)^2] == 1.
    z = jnp.linspace(-12.0, 12.0, 100001, dtype=jnp.float32)
    pdf = jnp.exp(-0.5 * z * z) / jnp.sqrt(2.0 * jnp.pi)
    s = jax.nn.silu(z)
    m2 = jnp.sum(s * s * pdf) * (z[1] - z[0])
    return float(1.0 / jnp.sqrt(m2))


SILU_C = _silu_norm_const()


def _selection_matrices():
    # Flat tp2 weight index: idx = (u*C2 + v)*C + k  with v = a*C + b
    #   => idx = u*(C2*C) + a*(C*C) + b*C + k
    idx = jnp.arange(WN)
    u = idx // (C2 * C)
    a = (idx // (C * C)) % C
    b = (idx // C) % C
    k = idx % C
    ch = jnp.arange(C)
    sel_u = (ch[:, None] == u[None, :]).astype(jnp.float32)   # [C, WN]  broadcasts xs[:,u]
    sel_a = (ch[:, None] == a[None, :]).astype(jnp.float32)   # [C, WN]  broadcasts xs[:,a]
    sel_b = (ch[:, None] == b[None, :]).astype(jnp.float32)   # [C, WN]  broadcasts xd[:,b]
    red_k = (k[:, None] == ch[None, :]).astype(jnp.float32)   # [WN, C]  reduces over (u,a,b)
    return sel_u, sel_a, sel_b, red_k


# ---------------- Pallas kernel ----------------
def conv_kernel(et_ref, xs_ref, xd_ref, oh_ref, w1_ref, w2_ref,
                a_ref, b_ref, d_ref, s_ref, out_ref):
    t = pl.program_id(1)

    @pl.when(t == 0)
    def _():
        out_ref[...] = jnp.zeros_like(out_ref)

    # fc: FullyConnectedNet([F0, H, WN], silu). All normalization constants are
    # pre-folded into w1/w2 in the wrapper.
    h = jax.nn.silu(jnp.dot(et_ref[...], w1_ref[...], preferred_element_type=jnp.float32))
    w = jnp.dot(h, w2_ref[...], preferred_element_type=jnp.float32)          # [TE, WN]

    # tp ⊗ tp2 contraction as MXU matmuls around one lane-dense [TE, WN] multiply:
    #   coeff_exp[e, idx] = xs[e,u] * xs[e,a] * xd[e,b]   (idx = (u*C2 + a*C + b)*C + k)
    #   msg[e, k]         = sum_idx coeff_exp[e, idx] * w[e, idx] * S[idx, k]
    xs = xs_ref[...]                                                         # [TE, C]
    xd = xd_ref[...]                                                         # [TE, C]
    cu = jnp.dot(xs, a_ref[...], preferred_element_type=jnp.float32)        # [TE, WN]
    ca = jnp.dot(xs, b_ref[...], preferred_element_type=jnp.float32)        # [TE, WN]
    cb = jnp.dot(xd, d_ref[...], preferred_element_type=jnp.float32)        # [TE, WN]
    msg = jnp.dot(cu * ca * cb * w, s_ref[...],
                  preferred_element_type=jnp.float32)                        # [TE, C]

    # scatter-add over edge_dst via pre-scaled one-hot matmul (MXU); accumulate
    # directly into the resident output block.
    out_ref[...] += jax.lax.dot_general(
        oh_ref[...], msg, (((0,), (0,)), ((), ())),
        preferred_element_type=jnp.float32)                                  # [N, C]


# ---------------- wrapper ----------------
@jax.jit
def convolution_v0(edge_src, edge_dst, node_pos, edge_type, w1, w2):
    # glue: data-dependent gathers / one-hot build stay in plain JAX
    x_src = node_pos[edge_src].astype(jnp.float32)                    # [E, C]
    x_dst = node_pos[edge_dst].astype(jnp.float32)                    # [E, C]
    onehot = (edge_dst[:, None] == jnp.arange(N)[None, :]).astype(jnp.float32)
    onehot = onehot * (1.0 / NUM_NEIGHBORS ** 0.5)                    # fold final scale

    # pad edges to a multiple of NUM_SPLITS*TE; padded rows have zero one-hot rows
    pad = E_PAD - edge_type.shape[0]
    et_p = jnp.pad(edge_type.astype(jnp.float32), ((0, pad), (0, 0)))
    xs_p = jnp.pad(x_src, ((0, pad), (0, 0)))
    xd_p = jnp.pad(x_dst, ((0, pad), (0, 0)))
    oh_p = jnp.pad(onehot, ((0, pad), (0, 0)))

    # fold scalar constants into the (edge-count independent) weights
    w1s = w1.astype(jnp.float32) * (1.0 / F0 ** 0.5)
    w2s = w2.astype(jnp.float32) * (SILU_C / (H ** 0.5) / ((C * C2) ** 0.5))

    sel_u, sel_a, sel_b, red_k = _selection_matrices()

    emap = lambda c, t: (c * TILES_PER_SPLIT + t, 0)   # edge-tiled inputs
    wmap = lambda c, t: (0, 0)                         # resident weights / constants

    partials = pl.pallas_call(
        conv_kernel,
        out_shape=jax.ShapeDtypeStruct((NUM_SPLITS, N, C), jnp.float32),
        grid=(NUM_SPLITS, TILES_PER_SPLIT),
        in_specs=[
            pl.BlockSpec((TE, F0), emap),   # edge_type tile
            pl.BlockSpec((TE, C), emap),    # x_src tile
            pl.BlockSpec((TE, C), emap),    # x_dst tile
            pl.BlockSpec((TE, N), emap),    # pre-scaled one-hot scatter tile
            pl.BlockSpec((F0, H), wmap),    # fc layer-1 weight (resident)
            pl.BlockSpec((H, WN), wmap),    # fc layer-2 weight (resident)
            pl.BlockSpec((C, WN), wmap),    # selection matrix: xs[u]
            pl.BlockSpec((C, WN), wmap),    # selection matrix: xs[a]
            pl.BlockSpec((C, WN), wmap),    # selection matrix: xd[b]
            pl.BlockSpec((WN, C), wmap),    # reduction matrix over (u,a,b)
        ],
        out_specs=pl.BlockSpec((None, N, C), lambda c, t: (c, 0, 0)),
        compiler_params=pltpu.CompilerParams(
            dimension_semantics=("parallel", "arbitrary")),
    )(et_p, xs_p, xd_p, oh_p, w1s, w2s, sel_u, sel_a, sel_b, red_k)

    # per-core partial accumulators (v7x 2-TC split) summed in XLA; trivial [2,16,4] add
    return partials.sum(axis=0)


# ---------------- pure-JAX reference (same math as the PyTorch module) ----------------
def reference(edge_src, edge_dst, node_pos, edge_type, w1, w2):
    x_src = node_pos[edge_src]
    x_dst = node_pos[edge_dst]
    h = jax.nn.silu(edge_type @ w1 / jnp.sqrt(float(F0))) * SILU_C
    w = h @ w2 / jnp.sqrt(float(H))
    mix = (x_src[:, :, None] * x_dst[:, None, :]).reshape(E, C2)
    w4 = w.reshape(E, C, C2, C)
    msg = jnp.einsum("euvk,eu,ev->ek", w4, x_src, mix) / jnp.sqrt(float(C * C2))
    out = jax.ops.segment_sum(msg, edge_dst, num_segments=N)
    return out / jnp.sqrt(NUM_NEIGHBORS)


if __name__ == "__main__":
    key = jax.random.PRNGKey(0)
    k1, k2, k3, k4, k5, k6 = jax.random.split(key, 6)
    node_pos = jax.random.normal(k1, (N, C), jnp.float32)
    edge_type = jax.random.normal(k2, (E, F0), jnp.float32)
    edge_src = jax.random.randint(k3, (E,), 0, N, dtype=jnp.int32)
    edge_dst = jax.random.randint(k4, (E,), 0, N, dtype=jnp.int32)
    # deterministic "parameters" (e3nn FullyConnectedNet weights ~ N(0,1))
    w1 = jax.random.normal(k5, (F0, H), jnp.float32)
    w2 = jax.random.normal(k6, (H, WN), jnp.float32)

    out = convolution_v0(edge_src, edge_dst, node_pos, edge_type, w1, w2)
    out = jax.block_until_ready(out)

    ref = reference(edge_src, edge_dst, node_pos, edge_type, w1, w2)
    assert out.shape == (N, C)
    assert jnp.allclose(out, ref, rtol=1e-4, atol=1e-4), (out, ref)
    print("KERNEL_OK")
</pallas_src>

<mosaic_0001>
module attributes {stable_mosaic.version = 11 : i64} {
  func.func @conv_kernel(%arg0: i32, %arg1: i32, %arg2: memref<128x8xf32, #tpu.memory_space<vmem>>, %arg3: memref<128x4xf32, #tpu.memory_space<vmem>>, %arg4: memref<128x4xf32, #tpu.memory_space<vmem>>, %arg5: memref<128x16xf32, #tpu.memory_space<vmem>>, %arg6: memref<8x16xf32, #tpu.memory_space<vmem>>, %arg7: memref<16x256xf32, #tpu.memory_space<vmem>>, %arg8: memref<4x256xf32, #tpu.memory_space<vmem>>, %arg9: memref<4x256xf32, #tpu.memory_space<vmem>>, %arg10: memref<4x256xf32, #tpu.memory_space<vmem>>, %arg11: memref<256x4xf32, #tpu.memory_space<vmem>>, %arg12: memref<1x16x4xf32, #tpu.memory_space<vmem>>) attributes {dimension_semantics = [#tpu.dimension_semantics<parallel>, #tpu.dimension_semantics<arbitrary>], iteration_bounds = array<i64: 2, 1>, scalar_prefetch = 0 : i64, scratch_operands = 0 : i64, tpu.core_type = #tpu.core_type<tc>, window_params = [{transform_indices = @transform_0, window_bounds = array<i64: 128, 8>}, {transform_indices = @transform_1, window_bounds = array<i64: 128, 4>}, {transform_indices = @transform_2, window_bounds = array<i64: 128, 4>}, {transform_indices = @transform_3, window_bounds = array<i64: 128, 16>}, {pipeline_mode = #tpu.pipeline_mode<synchronous>, transform_indices = @transform_4, window_bounds = array<i64: 8, 16>}, {pipeline_mode = #tpu.pipeline_mode<synchronous>, transform_indices = @transform_5, window_bounds = array<i64: 16, 256>}, {pipeline_mode = #tpu.pipeline_mode<synchronous>, transform_indices = @transform_6, window_bounds = array<i64: 4, 256>}, {pipeline_mode = #tpu.pipeline_mode<synchronous>, transform_indices = @transform_7, window_bounds = array<i64: 4, 256>}, {pipeline_mode = #tpu.pipeline_mode<synchronous>, transform_indices = @transform_8, window_bounds = array<i64: 4, 256>}, {pipeline_mode = #tpu.pipeline_mode<synchronous>, transform_indices = @transform_9, window_bounds = array<i64: 256, 4>}, {transform_indices = @transform_10, window_bounds = array<i64: 1, 16, 4>}]} {
    %c0_i32 = arith.constant 0 : i32
    %0 = arith.cmpi eq, %arg1, %c0_i32 : i32
    %1 = arith.extui %0 : i1 to i32
    %c0_i32_0 = arith.constant 0 : i32
    %2 = arith.cmpi ne, %1, %c0_i32_0 : i32
    scf.if %2 {
      %cst_33 = arith.constant 0.000000e+00 : f32
      %35 = vector.broadcast %cst_33 : f32 to vector<16x4xf32>
      %c0_34 = arith.constant 0 : index
      %c0_35 = arith.constant 0 : index
      %c0_36 = arith.constant 0 : index
      %36 = vector.load %arg12[%c0_34, %c0_35, %c0_36] : memref<1x16x4xf32, #tpu.memory_space<vmem>>, vector<1x16x4xf32>
      %37 = vector.shape_cast %36 : vector<1x16x4xf32> to vector<16x4xf32>
      %38 = vector.shape_cast %35 : vector<16x4xf32> to vector<1x16x4xf32>
      tpu.vector_store %arg12[%c0_34, %c0_35, %c0_36], %38 {strides = array<i32>} : memref<1x16x4xf32, #tpu.memory_space<vmem>>, vector<1x16x4xf32>,
    } else {
    }
    %c0 = arith.constant 0 : index
    %c0_1 = arith.constant 0 : index
    %3 = vector.load %arg2[%c0, %c0_1] : memref<128x8xf32, #tpu.memory_space<vmem>>, vector<128x8xf32>
    %c0_2 = arith.constant 0 : index
    %c0_3 = arith.constant 0 : index
    %4 = vector.load %arg6[%c0_2, %c0_3] : memref<8x16xf32, #tpu.memory_space<vmem>>, vector<8x16xf32>
    %cst = arith.constant dense<0.000000e+00> : vector<128x16xf32>
    %5 = tpu.matmul %3, %4, %cst {dimension_numbers = #tpu.dot_dimension_numbers<[1], [0], [0], [1], [0, 0, 1, 1], [], []>} : vector<128x8xf32>, vector<8x16xf32>, vector<128x16xf32> -> vector<128x16xf32>
    %6 = arith.negf %5 : vector<128x16xf32>
    %7 = math.exp %6 : vector<128x16xf32>
    %cst_4 = arith.constant 1.000000e+00 : f32
    %8 = vector.broadcast %cst_4 : f32 to vector<128x16xf32>
    %9 = arith.addf %8, %7 : vector<128x16xf32>
    %10 = arith.divf %8, %9 : vector<128x16xf32>
    %11 = arith.mulf %5, %10 : vector<128x16xf32>
    %c0_5 = arith.constant 0 : index
    %c0_6 = arith.constant 0 : index
    %12 = vector.load %arg7[%c0_5, %c0_6] : memref<16x256xf32, #tpu.memory_space<vmem>>, vector<16x256xf32>
    %cst_7 = arith.constant dense<0.000000e+00> : vector<128x256xf32>
    %13 = tpu.matmul %11, %12, %cst_7 {dimension_numbers = #tpu.dot_dimension_numbers<[1], [0], [0], [1], [0, 0, 1, 1], [], []>} : vector<128x16xf32>, vector<16x256xf32>, vector<128x256xf32> -> vector<128x256xf32>
    %c0_8 = arith.constant 0 : index
    %c0_9 = arith.constant 0 : index
    %14 = vector.load %arg3[%c0_8, %c0_9] : memref<128x4xf32, #tpu.memory_space<vmem>>, vector<128x4xf32>
    %c0_10 = arith.constant 0 : index
    %c0_11 = arith.constant 0 : index
    %15 = vector.load %arg4[%c0_10, %c0_11] : memref<128x4xf32, #tpu.memory_space<vmem>>, vector<128x4xf32>
    %c0_12 = arith.constant 0 : index
    %c0_13 = arith.constant 0 : index
    %16 = vector.load %arg8[%c0_12, %c0_13] : memref<4x256xf32, #tpu.memory_space<vmem>>, vector<4x256xf32>
    %cst_14 = arith.constant dense<0.000000e+00> : vector<128x256xf32>
    %17 = tpu.matmul %14, %16, %cst_14 {dimension_numbers = #tpu.dot_dimension_numbers<[1], [0], [0], [1], [0, 0, 1, 1], [], []>} : vector<128x4xf32>, vector<4x256xf32>, vector<128x256xf32> -> vector<128x256xf32>
    %c0_15 = arith.constant 0 : index
    %c0_16 = arith.constant 0 : index
    %18 = vector.load %arg9[%c0_15, %c0_16] : memref<4x256xf32, #tpu.memory_space<vmem>>, vector<4x256xf32>
    %cst_17 = arith.constant dense<0.000000e+00> : vector<128x256xf32>
    %19 = tpu.matmul %14, %18, %cst_17 {dimension_numbers = #tpu.dot_dimension_numbers<[1], [0], [0], [1], [0, 0, 1, 1], [], []>} : vector<128x4xf32>, vector<4x256xf32>, vector<128x256xf32> -> vector<128x256xf32>
    %c0_18 = arith.constant 0 : index
    %c0_19 = arith.constant 0 : index
    %20 = vector.load %arg10[%c0_18, %c0_19] : memref<4x256xf32, #tpu.memory_space<vmem>>, vector<4x256xf32>
    %cst_20 = arith.constant dense<0.000000e+00> : vector<128x256xf32>
    %21 = tpu.matmul %15, %20, %cst_20 {dimension_numbers = #tpu.dot_dimension_numbers<[1], [0], [0], [1], [0, 0, 1, 1], [], []>} : vector<128x4xf32>, vector<4x256xf32>, vector<128x256xf32> -> vector<128x256xf32>
    %22 = arith.mulf %17, %19 : vector<128x256xf32>
    %23 = arith.mulf %22, %21 : vector<128x256xf32>
    %24 = arith.mulf %23, %13 : vector<128x256xf32>
    %c0_21 = arith.constant 0 : index
    %c0_22 = arith.constant 0 : index
    %25 = vector.load %arg11[%c0_21, %c0_22] : memref<256x4xf32, #tpu.memory_space<vmem>>, vector<256x4xf32>
    %cst_23 = arith.constant dense<0.000000e+00> : vector<128x4xf32>
    %26 = tpu.matmul %24, %25, %cst_23 {dimension_numbers = #tpu.dot_dimension_numbers<[1], [0], [0], [1], [0, 0, 1, 1], [], []>} : vector<128x256xf32>, vector<256x4xf32>, vector<128x4xf32> -> vector<128x4xf32>
    %c0_24 = arith.constant 0 : index
    %c0_25 = arith.constant 0 : index
    %c0_26 = arith.constant 0 : index
    %27 = vector.load %arg12[%c0_24, %c0_25, %c0_26] : memref<1x16x4xf32, #tpu.memory_space<vmem>>, vector<1x16x4xf32>
    %28 = vector.shape_cast %27 : vector<1x16x4xf32> to vector<16x4xf32>
    %c0_27 = arith.constant 0 : index
    %c0_28 = arith.constant 0 : index
    %29 = vector.load %arg5[%c0_27, %c0_28] : memref<128x16xf32, #tpu.memory_space<vmem>>, vector<128x16xf32>
    %cst_29 = arith.constant dense<0.000000e+00> : vector<16x4xf32>
    %30 = tpu.matmul %29, %26, %cst_29 {dimension_numbers = #tpu.dot_dimension_numbers<[0], [0], [1], [1], [0, 1, 1, 1], [], []>} : vector<128x16xf32>, vector<128x4xf32>, vector<16x4xf32> -> vector<16x4xf32>
    %31 = arith.addf %28, %30 : vector<16x4xf32>
    %c0_30 = arith.constant 0 : index
    %c0_31 = arith.constant 0 : index
    %c0_32 = arith.constant 0 : index
    %32 = vector.load %arg12[%c0_30, %c0_31, %c0_32] : memref<1x16x4xf32, #tpu.memory_space<vmem>>, vector<1x16x4xf32>
    %33 = vector.shape_cast %32 : vector<1x16x4xf32> to vector<16x4xf32>
    %34 = vector.shape_cast %31 : vector<16x4xf32> to vector<1x16x4xf32>
    tpu.vector_store %arg12[%c0_30, %c0_31, %c0_32], %34 {strides = array<i32>} : memref<1x16x4xf32, #tpu.memory_space<vmem>>, vector<1x16x4xf32>,
    return
  }
  func.func @transform_0(%arg0: i32, %arg1: i32) -> (i32, i32) {
    %c1_i32 = arith.constant 1 : i32
    %0 = arith.muli %arg0, %c1_i32 : i32
    %1 = arith.addi %0, %arg1 : i32
    %c0_i32 = arith.constant 0 : i32
    %c0_i32_0 = arith.constant 0 : i32
    return %1, %c0_i32 : i32, i32
  }
  func.func @transform_1(%arg0: i32, %arg1: i32) -> (i32, i32) {
    %c1_i32 = arith.constant 1 : i32
    %0 = arith.muli %arg0, %c1_i32 : i32
    %1 = arith.addi %0, %arg1 : i32
    %c0_i32 = arith.constant 0 : i32
    %c0_i32_0 = arith.constant 0 : i32
    return %1, %c0_i32 : i32, i32
  }
  func.func @transform_2(%arg0: i32, %arg1: i32) -> (i32, i32) {
    %c1_i32 = arith.constant 1 : i32
    %0 = arith.muli %arg0, %c1_i32 : i32
    %1 = arith.addi %0, %arg1 : i32
    %c0_i32 = arith.constant 0 : i32
    %c0_i32_0 = arith.constant 0 : i32
    return %1, %c0_i32 : i32, i32
  }
  func.func @transform_3(%arg0: i32, %arg1: i32) -> (i32, i32) {
    %c1_i32 = arith.constant 1 : i32
    %0 = arith.muli %arg0, %c1_i32 : i32
    %1 = arith.addi %0, %arg1 : i32
    %c0_i32 = arith.constant 0 : i32
    %c0_i32_0 = arith.constant 0 : i32
    return %1, %c0_i32 : i32, i32
  }
  func.func @transform_4(%arg0: i32, %arg1: i32) -> (i32, i32) {
    %c0_i32 = arith.constant 0 : i32
    %c0_i32_0 = arith.constant 0 : i32
    %c0_i32_1 = arith.constant 0 : i32
    return %c0_i32, %c0_i32_0 : i32, i32
  }
  func.func @transform_5(%arg0: i32, %arg1: i32) -> (i32, i32) {
    %c0_i32 = arith.constant 0 : i32
    %c0_i32_0 = arith.constant 0 : i32
    %c0_i32_1 = arith.constant 0 : i32
    return %c0_i32, %c0_i32_0 : i32, i32
  }
  func.func @transform_6(%arg0: i32, %arg1: i32) -> (i32, i32) {
    %c0_i32 = arith.constant 0 : i32
    %c0_i32_0 = arith.constant 0 : i32
    %c0_i32_1 = arith.constant 0 : i32
    return %c0_i32, %c0_i32_0 : i32, i32
  }
  func.func @transform_7(%arg0: i32, %arg1: i32) -> (i32, i32) {
    %c0_i32 = arith.constant 0 : i32
    %c0_i32_0 = arith.constant 0 : i32
    %c0_i32_1 = arith.constant 0 : i32
    return %c0_i32, %c0_i32_0 : i32, i32
  }
  func.func @transform_8(%arg0: i32, %arg1: i32) -> (i32, i32) {
    %c0_i32 = arith.constant 0 : i32
    %c0_i32_0 = arith.constant 0 : i32
    %c0_i32_1 = arith.constant 0 : i32
    return %c0_i32, %c0_i32_0 : i32, i32
  }
  func.func @transform_9(%arg0: i32, %arg1: i32) -> (i32, i32) {
    %c0_i32 = arith.constant 0 : i32
    %c0_i32_0 = arith.constant 0 : i32
    %c0_i32_1 = arith.constant 0 : i32
    return %c0_i32, %c0_i32_0 : i32, i32
  }
  func.func @transform_10(%arg0: i32, %arg1: i32) -> (i32, i32, i32) {
    %c0_i32 = arith.constant 0 : i32
    %c0_i32_0 = arith.constant 0 : i32
    %c0_i32_1 = arith.constant 0 : i32
    return %arg0, %c0_i32, %c0_i32_0 : i32, i32, i32
  }
}

</mosaic_0001>

<bundles_post_ra>
// kernel: convolution_v0.1
= control target key start
LH: loop header
LB: loop body
LE: loop exit
PB: predicated region body
PF: predicated region fallthrough
CT: control target
= control target key end

     0   :  { %s2619_s13 = smov 0   ;;  %s2621_s14 = smov 0   ;;  %s3343_s0 = inlined_call_operand.vmem [shape: f32[256,8], index: 0, kind: input, shape index: {}]   ;;  %s3344_s1 = inlined_call_operand.vmem [shape: f32[256,4], index: 1, kind: input, shape index: {}]   ;;  %s3345_s2 = inlined_call_operand.vmem [shape: f32[256,4], index: 2, kind: input, shape index: {}]   ;;  %s3346_s3 = inlined_call_operand.vmem [shape: f32[256,16], index: 3, kind: input, shape index: {}]   ;;  %s3347_s4 = inlined_call_operand.vmem [shape: f32[8,16], index: 4, kind: input, shape index: {}]   ;;  %s3348_s5 = inlined_call_operand.vmem [shape: f32[16,256], index: 5, kind: input, shape index: {}]   ;;  %s3349_s6 = inlined_call_operand.vmem [shape: f32[4,256], index: 6, kind: input, shape index: {}]   ;;  %s3350_s7 = inlined_call_operand.vmem [shape: f32[4,256], index: 7, kind: input, shape index: {}]   ;;  %s3351_s8 = inlined_call_operand.vmem [shape: f32[4,256], index: 8, kind: input, shape index: {}]   ;;  %s3352_s9 = inlined_call_operand.vmem [shape: f32[256,4], index: 9, kind: input, shape index: {}]   ;;  %s3353_s10 = inlined_call_operand.vmem [shape: f32[2,16,4], index: 10, kind: output, shape index: {}]  }
   0x1   :  { %s2623_s15 = smov 0  }
   0x2 LB: > { %s32_s16 = sadd.s32 1, %s2557_s14  ;;  %p2151_p0 = scmp.ge.s32.totalorder %s2561_s15, 1  ;;  %s2561_s15 = sphi %s2623_s15, %s20_s15   ;;  %s2557_s14 = sphi %s2621_s14, %s3410_s14   ;;  %s2553_s13 = sphi %s2619_s13, %s3409_s13  }
   0x3   : > { %p34_p1 = scmp.ge.s32.totalorder %s32_s16, 2  ;;  %p374_p2 = scmp.lt.s32.totalorder %s2561_s15, 3 }
   0x5   : > { %s3412_s16 = smov (%p34_p1, %s32_s16), 0  ;;  %p375_p3 = pnand %p2151_p0, %p374_p2 }
   0x7   : > { %378 = sbr.rel (%p375_p3) target bundleno = 1012 (0x3f4), region = 60 }
   0xc   : > { %v491_v0 = vld [vmem:[%s3347_s4] sm:$0xff]  ;;  %s2152_s19 = sshll.u32 %s2553_s13, 4  ;;  %vm492_vm0 = vcmask 64512   ;;  %v801_v17 = vld [vmem:[%s3348_s5 + $0x18] sm:$0xff]  ;;  %v800_v18 = vld [vmem:[%s3348_s5 + $0x10] sm:$0xff]  ;;  %v3354_v21 = vmov 0.0  }
   0xd   : > { %2382 = vmatprep.subr.mxu0 %v491_v0  ;;  %p433_p4 = scmp.lt.s32.totalorder %s2152_s19, 31  ;;  %2443 = vmatprep.subr.mxu1 %v801_v17  ;;  %v799_v19 = vld [vmem:[%s3348_s5 + $0x8] sm:$0xff]  ;;  %v798_v20 = vld [vmem:[%s3348_s5] sm:$0xff]  ;;  %vm1096_vm1 = vcmask 1043456   ;;  %vm802_vm2 = vcmask 130048   ;;  %vm472_vm3 = vcmask 31744  }
   0xe   : > { %2383 = vmatpush3.msra.mxu0 %v491_v0  ;;  %2445 = vmatpush1.msra.mxu1 %v800_v18  ;;  %v2700_v22 = vld [vmem:[%s3349_s6] sm:$0xff]  ;;  %p463_p5 = scmp.lt.s32.totalorder %s2553_s13, 1 }
   0xf   : > { %s3414_s19 = smov (!%p433_p4, %s2152_s19), 31  ;;  %879 = vmatprep.subr.mxu0 %v801_v17  ;;  %2444 = vmatprep.subr.mxu1 %v799_v19  ;;  %v1046_v23 = vcombine.high %v2700_v22, %v2700_v22  ;;  %v2708_v24 = vld [vmem:[%s3350_s7] sm:$0xff] }
  0x10   : > { %s2643_s20 = sshll.u32 %s3414_s19, 3  ;;  %2446 = vmatpush1.msra.mxu1 %v798_v20  ;;  %933 = vmatprep.mubr.f32.mxu1 %v3354_v21  ;;  %v1264_v25 = vcombine.high %v2708_v24, %v2708_v24  ;;  %s3416_s13 = smov (!%p463_p5, %s2553_s13), 1 }
  0x11   : > { %s2649_s23 = scalar_lea.vmem %s3343_s0, %s2643_s20  ;;  %s2787_s25 = scalar_lea.vmem %s3344_s1, %s2643_s20 }
  0x12   : > { %v475_v1 = vld [vmem:[%s2649_s23] sm:$0xff]  ;;  %v476_v2 = vld [vmem:[%s2649_s23 + $0x8] sm:$0xff]  ;;  %v477_v3 = vld [vmem:[%s2649_s23 + $0x10] sm:$0xff]  ;;  %2228 = vmatprep.subr.msk.mxu1 %vm1096_vm1, %v1264_v25  ;;  %s2915_s28 = scalar_lea.vmem %s3345_s2, %s2643_s20  ;;  %s3125_s22 = scalar_lea.vmem %s3346_s3, %s2643_s20 }
  0x13   : > { %2384 = vmatprep.mubr.msk.f32.mxu0 %vm492_vm0, %v475_v1  ;;  %v478_v4 = vld [vmem:[%s2649_s23 + $0x18] sm:$0xff]  ;;  %v479_v5 = vld [vmem:[%s2649_s23 + $0x20] sm:$0xff]  ;;  %v480_v6 = vld [vmem:[%s2649_s23 + $0x28] sm:$0xff]  ;;  %s2266_s20 = sshll.u32 %s3416_s13, 4 }
  0x14   : > { %2385 = vmatmul.mubr.msk.f32.vlgmr.msra.gmra.mxu0 %vm492_vm0, %v476_v2  ;;  %v481_v7 = vld [vmem:[%s2649_s23 + $0x30] sm:$0xff]  ;;  %v482_v8 = vld [vmem:[%s2649_s23 + $0x38] sm:$0xff]  ;;  %v483_v9 = vld [vmem:[%s2649_s23 + $0x40] sm:$0xff] }
  0x15   : > { %2387 = vmatprep.mubr.msk.f32.mxu0 %vm492_vm0, %v477_v3  ;;  %v484_v10 = vld [vmem:[%s2649_s23 + $0x48] sm:$0xff]  ;;  %v485_v11 = vld [vmem:[%s2649_s23 + $0x50] sm:$0xff]  ;;  %v486_v12 = vld [vmem:[%s2649_s23 + $0x58] sm:$0xff]  ;;  %880 = vmatpush1.msra.mxu0 %v800_v18 }
  0x16   : > { %v487_v13 = vld [vmem:[%s2649_s23 + $0x60] sm:$0xff]  ;;  %v488_v14 = vld [vmem:[%s2649_s23 + $0x68] sm:$0xff]  ;;  %v489_v15 = vld [vmem:[%s2649_s23 + $0x70] sm:$0xff]  ;;  %881 = vmatprep.subr.mxu0 %v799_v19 }
  0x17   : > { %v490_v16 = vld [vmem:[%s2649_s23 + $0x78] sm:$0xff]  ;;  %882 = vmatpush1.msra.mxu0 %v798_v20  ;;  %v2756_v3 = vld [vmem:[%s3351_s8] sm:$0xff] }
  0x18   : > { %2388 = vmatmul.mubr.msk.f32.gmra.mxu0 %vm492_vm0, %v478_v4  ;;  %2210 = vmatprep.subr.msk.mxu0 %vm1096_vm1, %v1046_v23 }
  0x19   : > { %2390 = vmatprep.mubr.msk.f32.mxu0 %vm492_vm0, %v479_v5 }
  0x1c   : > { %2391 = vmatmul.mubr.msk.f32.gmra.mxu0 %vm492_vm0, %v480_v6 }
  0x1d   : > { %2393 = vmatprep.mubr.msk.f32.mxu0 %vm492_vm0, %v481_v7 }
  0x20   : > { %2394 = vmatmul.mubr.msk.f32.gmra.mxu0 %vm492_vm0, %v482_v8 }
  0x21   : > { %2396 = vmatprep.mubr.msk.f32.mxu0 %vm492_vm0, %v483_v9 }
  0x24   : > { %2397 = vmatmul.mubr.msk.f32.gmra.mxu0 %vm492_vm0, %v484_v10 }
  0x25   : > { %2399 = vmatprep.mubr.msk.f32.mxu0 %vm492_vm0, %v485_v11  ;;  %v1432_v11 = vcombine.high %v2756_v3, %v2756_v3 }
  0x28   : > { %2400 = vmatmul.mubr.msk.f32.gmra.mxu0 %vm492_vm0, %v486_v12 }
  0x29   : > { %2402 = vmatprep.mubr.msk.f32.mxu0 %vm492_vm0, %v487_v13 }
  0x2c   : > { %2403 = vmatmul.mubr.msk.f32.gmra.mxu0 %vm492_vm0, %v488_v14 }
  0x2d   : > { %2405 = vmatprep.mubr.msk.f32.mxu0 %vm492_vm0, %v489_v15 }
  0x30   : > { %2406 = vmatmul.mubr.msk.f32.gmra.mxu0 %vm492_vm0, %v490_v16 }
  0x31   : > { %915 = vmatprep.mubr.f32.mxu0 %v3354_v21 }
  0xd4   : > { %v2713_v26 = vpop.f32.mrf.mxu0 }
  0xd5   : > { %v2179_v27 = vmul.f32 -1.442695, %v2713_v26 }
  0xd6   : > { %v2716_v28 = vpop.f32.mrf.mxu0 }
  0xd7   : > { %2475 = vpow2.f32 %v2179_v27  ;;  %v2178_v29 = vmul.f32 -1.442695, %v2716_v28 }
  0xd8   : > { %v2719_v30 = vpop.f32.mrf.mxu0 }
  0xd9   : > { %2477 = vpow2.f32 %v2178_v29  ;;  %v2181_v31 = vmul.f32 -1.442695, %v2719_v30  ;;  %v2795_v29 = vld [vmem:[%s2787_s25] sm:$0xff] }
  0xda   : > { %v2722_v32 = vpop.f32.mrf.mxu0 }
  0xdb   : > { %2479 = vpow2.f32 %v2181_v31  ;;  %v2180_v33 = vmul.f32 -1.442695, %v2722_v32 }
  0xdc   : > { %v2725_v34 = vpop.f32.mrf.mxu0 }
  0xdd   : > { %2481 = vpow2.f32 %v2180_v33  ;;  %v2183_v35 = vmul.f32 -1.442695, %v2725_v34 }
  0xde   : > { %v2728_v36 = vpop.f32.mrf.mxu0 }
  0xdf   : > { %2483 = vpow2.f32 %v2183_v35  ;;  %v2182_v37 = vmul.f32 -1.442695, %v2728_v36  ;;  %v2804_v35 = vld [vmem:[%s2787_s25 + $0x8] sm:$0xff] }
  0xe0   : > { %v2731_v38 = vpop.f32.mrf.mxu0 }
  0xe1   : > { %2485 = vpow2.f32 %v2182_v37  ;;  %v2185_v40 = vmul.f32 -1.442695, %v2731_v38 }
  0xe2   : > { %v2733_v39 = vpop.f32.mrf.mxu0 }
  0xe3   : > { %v2184_v41 = vmul.f32 -1.442695, %v2733_v39 }
  0xe4   : > { %v2476_v42 = vpop.eup %2475  ;;  %v2737_v43 = vpop.f32.mrf.mxu0 }
  0xe5   : > { %v735_v44 = vadd.f32 1.0, %v2476_v42  ;;  %2487 = vpow2.f32 %v2184_v41  ;;  %v2187_v53 = vmul.f32 -1.442695, %v2737_v43  ;;  %v2815_v41 = vld [vmem:[%s2787_s25 + $0x10] sm:$0xff] }
  0xe6   : > { %v2478_v45 = vpop.eup %2477  ;;  %v2739_v46 = vpop.f32.mrf.mxu0  ;;  %2489 = vpow2.f32 %v2185_v40 }
  0xe7   : > { %v734_v47 = vadd.f32 1.0, %v2478_v45  ;;  %v2186_v48 = vmul.f32 -1.442695, %v2739_v46  ;;  %2491 = vrcp.f32 %v735_v44 }
  0xe8   : > { %v2480_v49 = vpop.eup %2479  ;;  %v2742_v50 = vpop.f32.mrf.mxu0 }
  0xe9   : > { %2493 = vrcp.f32 %v734_v47  ;;  %v737_v51 = vadd.f32 1.0, %v2480_v49  ;;  %v2189_v63 = vmul.f32 -1.442695, %v2742_v50  ;;  %v2824_v47 = vld [vmem:[%s2787_s25 + $0x18] sm:$0xff] }
  0xea   : > { %v2482_v52 = vpop.eup %2481  ;;  %2495 = vpow2.f32 %v2186_v48  ;;  %v2745_v55 = vpop.f32.mrf.mxu0 }
  0xeb   : > { %2497 = vrcp.f32 %v737_v51  ;;  %v736_v54 = vadd.f32 1.0, %v2482_v52  ;;  %v2188_v58 = vmul.f32 -1.442695, %v2745_v55  ;;  %v2833_v52 = vld [vmem:[%s2787_s25 + $0x20] sm:$0xff] }
  0xec   : > { %v2484_v56 = vpop.eup %2483  ;;  %2499 = vpow2.f32 %v2187_v53  ;;  %v2748_v61 = vpop.f32.mrf.mxu0 }
  0xed   : > { %2501 = vrcp.f32 %v736_v54  ;;  %v739_v59 = vadd.f32 1.0, %v2484_v56  ;;  %v2191_v14 = vmul.f32 -1.442695, %v2748_v61 }
  0xee   : > { %v2486_v57 = vpop.eup %2485  ;;  %v2751_v1 = vpop.f32.mrf.mxu0 }
  0xef   : > { %v738_v60 = vadd.f32 1.0, %v2486_v57  ;;  %v2190_v6 = vmul.f32 -1.442695, %v2751_v1  ;;  %v2842_v57 = vld [vmem:[%s2787_s25 + $0x28] sm:$0xff] }
  0xf0   : > { %v2760_v10 = vpop.f32.mrf.mxu0 }
  0xf1   : > { %2503 = vrcp.f32 %v738_v60  ;;  %v2851_v60 = vld [vmem:[%s2787_s25 + $0x30] sm:$0xff] }
  0xf2   : > { %v2488_v62 = vpop.eup %2487  ;;  %2505 = vpow2.f32 %v2188_v58  ;;  %v2771_v18 = vpop.f32.mrf.mxu0 }
  0xf3   : > { %2507 = vrcp.f32 %v739_v59  ;;  %v740_v0 = vadd.f32 1.0, %v2488_v62  ;;  %v2490_v2 = vpop.eup %2489 }
  0xf4   : > { %v2492_v4 = vpop.eup %2491  ;;  %2509 = vpow2.f32 %v2189_v63  ;;  %v741_v9 = vadd.f32 1.0, %v2490_v2  ;;  %v2860_v63 = vld [vmem:[%s2787_s25 + $0x38] sm:$0xff] }
  0xf5   : > { %2511 = vrcp.f32 %v740_v0  ;;  %v783_v16 = vmul.f32 %v2492_v4, %v2713_v26 }
  0xf6   : > { %v2494_v5 = vpop.eup %2493  ;;  %2513 = vpow2.f32 %v2190_v6 }
  0xf7   : > { %v2496_v7 = vpop.eup %2495  ;;  %v782_v8 = vmul.f32 %v2494_v5, %v2716_v28  ;;  %2515 = vrcp.f32 %v741_v9  ;;  %v2193_v28 = vmul.f32 -1.442695, %v2760_v10  ;;  %v1024_v9 = vld [vmem:[%s2787_s25 + $0x60] sm:$0xff] }
  0xf8   : > { %v2498_v12 = vpop.eup %2497  ;;  %v742_v17 = vadd.f32 1.0, %v2496_v7  ;;  %2517 = vpow2.f32 %v2191_v14  ;;  %v1029_v14 = vld [vmem:[%s2915_s28 + $0x8] sm:$0xff] }
  0xf9   : > { %v785_v13 = vmul.f32 %v2498_v12, %v2719_v30  ;;  %2194 = vmatmul.mubr.msk.f32.vlgmr.msra.gmra.mxu0 %vm802_vm2, %v782_v8  ;;  %v2500_v15 = vpop.eup %2499  ;;  %v1023_v8 = vld [vmem:[%s2787_s25 + $0x58] sm:$0xff] }
  0xfa   : > { %921 = vmatprep.mubr.f32.mxu0 %v3354_v21  ;;  %2211 = vmatpush1.msk.msra.mxu0 %vm1096_vm1, %v2700_v22  ;;  %v2502_v19 = vpop.eup %2501  ;;  %v2192_v22 = vmul.f32 -1.442695, %v2771_v18  ;;  %v743_v27 = vadd.f32 1.0, %v2500_v15  ;;  %2519 = vrcp.f32 %v742_v17  ;;  %v1027_v12 = vld [vmem:[%s2787_s25 + $0x78] sm:$0xff]  ;;  %v1030_v15 = vld [vmem:[%s2915_s28 + $0x10] sm:$0xff]  ;;  %v1032_v17 = vld [vmem:[%s2915_s28 + $0x20] sm:$0xff] }
  0xfb   : > { %2197 = vmatmul.mubr.msk.f32.vlgmr.msra.gmra.mxu1 %vm802_vm2, %v785_v13  ;;  %2246 = vmatprep.subr.msk.mxu0 %vm1096_vm1, %v1432_v11  ;;  %v784_v25 = vmul.f32 %v2502_v19, %v2722_v32  ;;  %v1026_v11 = vld [vmem:[%s2787_s25 + $0x70] sm:$0xff]  ;;  %v1028_v13 = vld [vmem:[%s2915_s28] sm:$0xff] }
  0xfc   : > { %939 = vmatprep.mubr.f32.mxu1 %v3354_v21  ;;  %2229 = vmatpush1.msk.msra.mxu1 %vm1096_vm1, %v2708_v24  ;;  %2521 = vpow2.f32 %v2192_v22  ;;  %v1034_v19 = vld [vmem:[%s2915_s28 + $0x30] sm:$0xff]  ;;  %v1036_v22 = vld [vmem:[%s2915_s28 + $0x40] sm:$0xff] }
  0xfd   : > { %2195 = vmatmul.mubr.msk.f32.gmra.mxu0 %vm802_vm2, %v783_v16  ;;  %2523 = vrcp.f32 %v743_v27  ;;  %v1031_v16 = vld [vmem:[%s2915_s28 + $0x18] sm:$0xff] }
  0xfe   : > { %v2504_v20 = vpop.eup %2503  ;;  %927 = vmatprep.mubr.f32.mxu0 %v3354_v21  ;;  %2525 = vpow2.f32 %v2193_v28  ;;  %v1757_v27 = vld [vmem:[%s3352_s9 + $0x78] sm:$0xff]  ;;  %v1772_v28 = vld [vmem:[%s3352_s9 + $0xf0] sm:$0xff] }
  0xff   : > { %v2506_v23 = vpop.eup %2505  ;;  %v786_v26 = vmul.f32 %v2504_v20, %v2728_v36  ;;  %v1035_v20 = vld [vmem:[%s2915_s28 + $0x38] sm:$0xff] }
 0x100   : > { %v2508_v24 = vpop.eup %2507  ;;  %v744_v32 = vadd.f32 1.0, %v2506_v23  ;;  %v1037_v23 = vld [vmem:[%s2915_s28 + $0x48] sm:$0xff] }
 0x101   : > { %2196 = vmatmul.mubr.msk.f32.gmra.mxu0 %vm802_vm2, %v784_v25  ;;  %2198 = vmatmul.mubr.msk.f32.gmra.mxu1 %vm802_vm2, %v786_v26  ;;  %v2510_v30 = vpop.eup %2509  ;;  %v787_v31 = vmul.f32 %v2508_v24, %v2725_v34  ;;  %v1038_v25 = vld [vmem:[%s2915_s28 + $0x50] sm:$0xff]  ;;  %v1773_v26 = vld [vmem:[%s3352_s9 + $0xf8] sm:$0xff] }
 0x102   : > { %945 = vmatprep.mubr.f32.mxu1 %v3354_v21  ;;  %1165 = vmatprep.mubr.f32.mxu0 %v3354_v21  ;;  %v2512_v33 = vpop.eup %2511  ;;  %v745_v34 = vadd.f32 1.0, %v2510_v30  ;;  %2527 = vrcp.f32 %v744_v32  ;;  %v1039_v24 = vld [vmem:[%s2915_s28 + $0x58] sm:$0xff]  ;;  %v1771_v30 = vld [vmem:[%s3352_s9 + $0xe8] sm:$0xff] }
 0x103   : > { %v2514_v36 = vpop.eup %2513  ;;  %v788_v37 = vmul.f32 %v2512_v33, %v2733_v39  ;;  %2284 = vmatprep.subr.mxu1 %v1773_v26  ;;  %v1755_v32 = vld [vmem:[%s3352_s9 + $0x68] sm:$0xff]  ;;  %v1770_v33 = vld [vmem:[%s3352_s9 + $0xe0] sm:$0xff] }
 0x104   : > { %v2516_v40 = vpop.eup %2515  ;;  %2529 = vrcp.f32 %v745_v34  ;;  %v746_v44 = vadd.f32 1.0, %v2514_v36  ;;  %v1769_v36 = vld [vmem:[%s3352_s9 + $0xd8] sm:$0xff] }
 0x105   : > { %2199 = vmatmul.mubr.msk.f32.gmra.mxu1 %vm802_vm2, %v787_v31  ;;  %2212 = vmatmul.mubr.msk.f32.vlgmr.msra.gmra.mxu0 %vm472_vm3, %v2795_v29  ;;  %v2518_v42 = vpop.eup %2517  ;;  %v789_v39 = vmul.f32 %v2516_v40, %v2731_v38  ;;  %v1040_v31 = vld [vmem:[%s2915_s28 + $0x60] sm:$0xff]  ;;  %v1753_v34 = vld [vmem:[%s3352_s9 + $0x58] sm:$0xff]  ;;  %v1768_v40 = vld [vmem:[%s3352_s9 + $0xd0] sm:$0xff] }
 0x106   : > { %951 = vmatprep.mubr.f32.mxu1 %v3354_v21  ;;  %1171 = vmatprep.mubr.f32.mxu0 %v3354_v21  ;;  %v747_v51 = vadd.f32 1.0, %v2518_v42  ;;  %2531 = vrcp.f32 %v746_v44  ;;  %v1767_v42 = vld [vmem:[%s3352_s9 + $0xc8] sm:$0xff] }
 0x107   : > { %2247 = vmatpush1.msk.msra.mxu0 %vm1096_vm1, %v2756_v3  ;;  %v2520_v45 = vpop.eup %2519  ;;  %v1751_v44 = vld [vmem:[%s3352_s9 + $0x48] sm:$0xff] }
 0x108   : > { %v790_v49 = vmul.f32 %v2520_v45, %v2739_v46  ;;  %2533 = vrcp.f32 %v747_v51  ;;  %v1766_v45 = vld [vmem:[%s3352_s9 + $0xc0] sm:$0xff]  ;;  %v1749_v51 = vld [vmem:[%s3352_s9 + $0x38] sm:$0xff] }
 0x109   : > { %2200 = vmatmul.mubr.msk.f32.gmra.mxu1 %vm802_vm2, %v788_v37  ;;  %2213 = vmatmul.mubr.msk.f32.gmra.mxu0 %vm472_vm3, %v2804_v35  ;;  %v2522_v48 = vpop.eup %2521  ;;  %v1041_v37 = vld [vmem:[%s2915_s28 + $0x68] sm:$0xff] }
 0x10a   : > { %957 = vmatprep.mubr.f32.mxu1 %v3354_v21  ;;  %1177 = vmatprep.mubr.f32.mxu0 %v3354_v21  ;;  %v2524_v38 = vpop.eup %2523  ;;  %v748_v46 = vadd.f32 1.0, %v2522_v48  ;;  %v1765_v48 = vld [vmem:[%s3352_s9 + $0xb8] sm:$0xff] }
 0x10b   : > { %v2526_v53 = vpop.eup %2525  ;;  %v791_v54 = vmul.f32 %v2524_v38, %v2737_v43  ;;  %v1764_v38 = vld [vmem:[%s3352_s9 + $0xb0] sm:$0xff] }
 0x10c   : > { %v749_v59 = vadd.f32 1.0, %v2526_v53  ;;  %2535 = vrcp.f32 %v748_v46  ;;  %v1763_v53 = vld [vmem:[%s3352_s9 + $0xa8] sm:$0xff]  ;;  %v1762_v46 = vld [vmem:[%s3352_s9 + $0xa0] sm:$0xff] }
 0x10d   : > { %2201 = vmatmul.mubr.msk.f32.gmra.mxu1 %vm802_vm2, %v789_v39  ;;  %2214 = vmatmul.mubr.msk.f32.gmra.mxu0 %vm472_vm3, %v2815_v41  ;;  %v1042_v39 = vld [vmem:[%s2915_s28 + $0x70] sm:$0xff] }
 0x10e   : > { %963 = vmatprep.mubr.f32.mxu1 %v3354_v21  ;;  %1183 = vmatprep.mubr.f32.mxu0 %v3354_v21  ;;  %2537 = vrcp.f32 %v749_v59  ;;  %v1760_v59 = vld [vmem:[%s3352_s9 + $0x90] sm:$0xff] }
 0x10f   : > { %v2528_v56 = vpop.eup %2527 }
 0x110   : > { %v792_v58 = vmul.f32 %v2528_v56, %v2745_v55  ;;  %v1746_v56 = vld [vmem:[%s3352_s9 + $0x20] sm:$0xff] }
 0x111   : > { %2202 = vmatmul.mubr.msk.f32.gmra.mxu1 %vm802_vm2, %v790_v49  ;;  %2215 = vmatmul.mubr.msk.f32.gmra.mxu0 %vm472_vm3, %v2824_v47  ;;  %v2530_v43 = vpop.eup %2529  ;;  %v1043_v49 = vld [vmem:[%s2915_s28 + $0x78] sm:$0xff] }
 0x112   : > { %969 = vmatprep.mubr.f32.mxu1 %v3354_v21  ;;  %1189 = vmatprep.mubr.f32.mxu0 %v3354_v21  ;;  %v793_v62 = vmul.f32 %v2530_v43, %v2742_v50  ;;  %v1020_v50 = vld [vmem:[%s2787_s25 + $0x40] sm:$0xff]  ;;  %v1744_v43 = vld [vmem:[%s3352_s9 + $0x10] sm:$0xff] }
 0x113   : > { %v2532_v55 = vpop.eup %2531 }
 0x114   : > { %v794_v0 = vmul.f32 %v2532_v55, %v2751_v1  ;;  %v1021_v1 = vld [vmem:[%s2787_s25 + $0x48] sm:$0xff]  ;;  %v1758_v55 = vld [vmem:[%s3352_s9 + $0x80] sm:$0xff] }
 0x115   : > { %2203 = vmatmul.mubr.msk.f32.gmra.mxu1 %vm802_vm2, %v791_v54  ;;  %2216 = vmatmul.mubr.msk.f32.gmra.mxu0 %vm472_vm3, %v2833_v52  ;;  %v2534_v2 = vpop.eup %2533  ;;  %v1747_v54 = vld [vmem:[%s3352_s9 + $0x28] sm:$0xff] }
 0x116   : > { %975 = vmatprep.mubr.f32.mxu1 %v3354_v21  ;;  %1195 = vmatprep.mubr.f32.mxu0 %v3354_v21  ;;  %v795_v3 = vmul.f32 %v2534_v2, %v2748_v61  ;;  %v1022_v61 = vld [vmem:[%s2787_s25 + $0x50] sm:$0xff] }
 0x119   : > { %2204 = vmatmul.mubr.msk.f32.gmra.mxu1 %vm802_vm2, %v792_v58  ;;  %2217 = vmatmul.mubr.msk.f32.gmra.mxu0 %vm472_vm3, %v2842_v57  ;;  %v2536_v4 = vpop.eup %2535  ;;  %v1745_v58 = vld [vmem:[%s3352_s9 + $0x18] sm:$0xff] }
 0x11a   : > { %981 = vmatprep.mubr.f32.mxu1 %v3354_v21  ;;  %1201 = vmatprep.mubr.f32.mxu0 %v3354_v21  ;;  %v796_v5 = vmul.f32 %v2536_v4, %v2771_v18  ;;  %v1033_v18 = vld [vmem:[%s2915_s28 + $0x28] sm:$0xff] }
 0x11b   : > { %v2538_v6 = vpop.eup %2537 }
 0x11c   : > { %v797_v7 = vmul.f32 %v2538_v6, %v2760_v10  ;;  %v1025_v10 = vld [vmem:[%s2787_s25 + $0x68] sm:$0xff]  ;;  %s3308_s25 = scalar_lea.vmem %s3353_s10, %s2266_s20 }
 0x11d   : > { %2205 = vmatmul.mubr.msk.f32.gmra.mxu1 %vm802_vm2, %v793_v62  ;;  %2218 = vmatmul.mubr.msk.f32.gmra.mxu0 %vm472_vm3, %v2851_v60  ;;  %v1743_v62 = vld [vmem:[%s3352_s9 + $0x8] sm:$0xff] }
 0x11e   : > { %987 = vmatprep.mubr.f32.mxu1 %v3354_v21  ;;  %1207 = vmatprep.mubr.f32.mxu0 %v3354_v21 }
 0x121   : > { %2206 = vmatmul.mubr.msk.f32.gmra.mxu1 %vm802_vm2, %v794_v0  ;;  %2219 = vmatmul.mubr.msk.f32.gmra.mxu0 %vm472_vm3, %v2860_v63 }
 0x122   : > { %993 = vmatprep.mubr.f32.mxu1 %v3354_v21  ;;  %1213 = vmatprep.mubr.f32.mxu0 %v3354_v21 }
 0x125   : > { %2207 = vmatmul.mubr.msk.f32.gmra.mxu1 %vm802_vm2, %v795_v3  ;;  %2220 = vmatmul.mubr.msk.f32.gmra.mxu0 %vm472_vm3, %v1020_v50 }
 0x126   : > { %999 = vmatprep.mubr.f32.mxu1 %v3354_v21  ;;  %1219 = vmatprep.mubr.f32.mxu0 %v3354_v21 }
 0x129   : > { %2208 = vmatmul.mubr.msk.f32.gmra.mxu1 %vm802_vm2, %v796_v5  ;;  %2221 = vmatmul.mubr.msk.f32.gmra.mxu0 %vm472_vm3, %v1021_v1 }
 0x12a   : > { %1005 = vmatprep.mubr.f32.mxu1 %v3354_v21  ;;  %1225 = vmatprep.mubr.f32.mxu0 %v3354_v21 }
 0x12d   : > { %2209 = vmatmul.mubr.msk.f32.gmra.mxu1 %vm802_vm2, %v797_v7  ;;  %2222 = vmatmul.mubr.msk.f32.gmra.mxu0 %vm472_vm3, %v1022_v61 }
 0x12e   : > { %1231 = vmatprep.mubr.f32.mxu0 %v3354_v21  ;;  %1333 = vmatprep.mubr.f32.mxu1 %v3354_v21 }
 0x131   : > { %2223 = vmatmul.mubr.msk.f32.gmra.mxu0 %vm472_vm3, %v1023_v8  ;;  %2230 = vmatmul.mubr.msk.f32.vlgmr.msra.gmra.mxu1 %vm472_vm3, %v2795_v29  ;;  %v1756_v29 = vld [vmem:[%s3352_s9 + $0x70] sm:$0xff] }
 0x132   : > { %1237 = vmatprep.mubr.f32.mxu0 %v3354_v21  ;;  %1339 = vmatprep.mubr.f32.mxu1 %v3354_v21 }
 0x133   : > { %2285 = vmatpush3.msra.mxu1 %v1757_v27 }
 0x134   : > { %2286 = vmatprep.subr.mxu1 %v1772_v28 }
 0x135   : > { %2224 = vmatmul.mubr.msk.f32.gmra.mxu0 %vm472_vm3, %v1024_v9  ;;  %2231 = vmatmul.mubr.msk.f32.gmra.mxu1 %vm472_vm3, %v2804_v35  ;;  %v1754_v35 = vld [vmem:[%s3352_s9 + $0x60] sm:$0xff] }
 0x136   : > { %1243 = vmatprep.mubr.f32.mxu0 %v3354_v21  ;;  %1345 = vmatprep.mubr.f32.mxu1 %v3354_v21 }
 0x137   : > { %2287 = vmatpush3.msra.mxu1 %v1756_v29 }
 0x138   : > { %2288 = vmatprep.subr.mxu1 %v1771_v30 }
 0x139   : > { %2225 = vmatmul.mubr.msk.f32.gmra.mxu0 %vm472_vm3, %v1025_v10  ;;  %2232 = vmatmul.mubr.msk.f32.gmra.mxu1 %vm472_vm3, %v2815_v41  ;;  %v1752_v41 = vld [vmem:[%s3352_s9 + $0x50] sm:$0xff] }
 0x13a   : > { %1249 = vmatprep.mubr.f32.mxu0 %v3354_v21  ;;  %1351 = vmatprep.mubr.f32.mxu1 %v3354_v21 }
 0x13b   : > { %2289 = vmatpush3.msra.mxu1 %v1755_v32 }
 0x13c   : > { %2290 = vmatprep.subr.mxu1 %v1770_v33 }
 0x13d   : > { %2226 = vmatmul.mubr.msk.f32.gmra.mxu0 %vm472_vm3, %v1026_v11  ;;  %2233 = vmatmul.mubr.msk.f32.gmra.mxu1 %vm472_vm3, %v2824_v47  ;;  %v1750_v47 = vld [vmem:[%s3352_s9 + $0x40] sm:$0xff] }
 0x13e   : > { %1255 = vmatprep.mubr.f32.mxu0 %v3354_v21  ;;  %1357 = vmatprep.mubr.f32.mxu1 %v3354_v21 }
 0x13f   : > { %2291 = vmatpush3.msra.mxu1 %v1754_v35 }
 0x140   : > { %2292 = vmatprep.subr.mxu1 %v1769_v36 }
 0x141   : > { %2227 = vmatmul.mubr.msk.f32.gmra.mxu0 %vm472_vm3, %v1027_v12  ;;  %2234 = vmatmul.mubr.msk.f32.gmra.mxu1 %vm472_vm3, %v2833_v52  ;;  %v1748_v52 = vld [vmem:[%s3352_s9 + $0x30] sm:$0xff] }
 0x142   : > { %1363 = vmatprep.mubr.f32.mxu1 %v3354_v21  ;;  %1549 = vmatprep.mubr.f32.mxu0 %v3354_v21 }
 0x143   : > { %2293 = vmatpush3.msra.mxu1 %v1753_v34 }
 0x144   : > { %2294 = vmatprep.subr.mxu1 %v1768_v40 }
 0x145   : > { %2235 = vmatmul.mubr.msk.f32.gmra.mxu1 %vm472_vm3, %v2842_v57  ;;  %2248 = vmatmul.mubr.msk.f32.vlgmr.msra.gmra.mxu0 %vm472_vm3, %v1028_v13  ;;  %v1761_v57 = vld [vmem:[%s3352_s9 + $0x98] sm:$0xff] }
 0x146   : > { %1369 = vmatprep.mubr.f32.mxu1 %v3354_v21  ;;  %1555 = vmatprep.mubr.f32.mxu0 %v3354_v21 }
 0x147   : > { %2295 = vmatpush3.msra.mxu1 %v1752_v41 }
 0x148   : > { %2296 = vmatprep.subr.mxu1 %v1767_v42 }
 0x149   : > { %2236 = vmatmul.mubr.msk.f32.gmra.mxu1 %vm472_vm3, %v2851_v60  ;;  %2249 = vmatmul.mubr.msk.f32.gmra.mxu0 %vm472_vm3, %v1029_v14  ;;  %v1759_v60 = vld [vmem:[%s3352_s9 + $0x88] sm:$0xff]  ;;  %v1921_v14 = vld [vmem:[%s3125_s22] sm:$0xff] }
 0x14a   : > { %1375 = vmatprep.mubr.f32.mxu1 %v3354_v21  ;;  %1561 = vmatprep.mubr.f32.mxu0 %v3354_v21 }
 0x14b   : > { %2297 = vmatpush3.msra.mxu1 %v1751_v44  ;;  %1937 = vxpose.xlu0.b32.start [1/16] (narrow) %v1921_v14, 16 }
 0x14c   : > { %2298 = vmatprep.subr.mxu1 %v1766_v45 }
 0x14d   : > { %2237 = vmatmul.mubr.msk.f32.gmra.mxu1 %vm472_vm3, %v2860_v63  ;;  %2250 = vmatmul.mubr.msk.f32.gmra.mxu0 %vm472_vm3, %v1030_v15  ;;  %v1742_v63 = vld [vmem:[%s3352_s9] sm:$0xff] }
 0x14e   : > { %1381 = vmatprep.mubr.f32.mxu1 %v3354_v21  ;;  %1567 = vmatprep.mubr.f32.mxu0 %v3354_v21 }
 0x14f   : > { %2299 = vmatpush3.msra.mxu1 %v1750_v47 }
 0x150   : > { %2300 = vmatprep.subr.mxu1 %v1765_v48 }
 0x151   : > { %2238 = vmatmul.mubr.msk.f32.gmra.mxu1 %vm472_vm3, %v1020_v50  ;;  %2251 = vmatmul.mubr.msk.f32.gmra.mxu0 %vm472_vm3, %v1031_v16 }
 0x152   : > { %1387 = vmatprep.mubr.f32.mxu1 %v3354_v21  ;;  %1573 = vmatprep.mubr.f32.mxu0 %v3354_v21 }
 0x153   : > { %2301 = vmatpush3.msra.mxu1 %v1749_v51 }
 0x154   : > { %2302 = vmatprep.subr.mxu1 %v1764_v38 }
 0x155   : > { %2239 = vmatmul.mubr.msk.f32.gmra.mxu1 %vm472_vm3, %v1021_v1  ;;  %2252 = vmatmul.mubr.msk.f32.gmra.mxu0 %vm472_vm3, %v1032_v17 }
 0x156   : > { %1393 = vmatprep.mubr.f32.mxu1 %v3354_v21  ;;  %1579 = vmatprep.mubr.f32.mxu0 %v3354_v21 }
 0x157   : > { %2303 = vmatpush3.msra.mxu1 %v1748_v52 }
 0x158   : > { %2304 = vmatprep.subr.mxu1 %v1763_v53 }
 0x159   : > { %2240 = vmatmul.mubr.msk.f32.gmra.mxu1 %vm472_vm3, %v1022_v61  ;;  %2253 = vmatmul.mubr.msk.f32.gmra.mxu0 %vm472_vm3, %v1033_v18 }
 0x15a   : > { %1399 = vmatprep.mubr.f32.mxu1 %v3354_v21  ;;  %1585 = vmatprep.mubr.f32.mxu0 %v3354_v21 }
 0x15b   : > { %2305 = vmatpush3.msra.mxu1 %v1747_v54 }
 0x15c   : > { %2306 = vmatprep.subr.mxu1 %v1762_v46 }
 0x15d   : > { %2241 = vmatmul.mubr.msk.f32.gmra.mxu1 %vm472_vm3, %v1023_v8  ;;  %2254 = vmatmul.mubr.msk.f32.gmra.mxu0 %vm472_vm3, %v1034_v19 }
 0x15e   : > { %1405 = vmatprep.mubr.f32.mxu1 %v3354_v21  ;;  %1591 = vmatprep.mubr.f32.mxu0 %v3354_v21 }
 0x15f   : > { %2307 = vmatpush3.msra.mxu1 %v1746_v56 }
 0x160   : > { %2308 = vmatprep.subr.mxu1 %v1761_v57 }
 0x161   : > { %2242 = vmatmul.mubr.msk.f32.gmra.mxu1 %vm472_vm3, %v1024_v9  ;;  %2255 = vmatmul.mubr.msk.f32.gmra.mxu0 %vm472_vm3, %v1035_v20 }
 0x162   : > { %1411 = vmatprep.mubr.f32.mxu1 %v3354_v21  ;;  %1597 = vmatprep.mubr.f32.mxu0 %v3354_v21 }
 0x163   : > { %2309 = vmatpush3.msra.mxu1 %v1745_v58 }
 0x164   : > { %2310 = vmatprep.subr.mxu1 %v1760_v59 }
 0x165   : > { %2243 = vmatmul.mubr.msk.f32.gmra.mxu1 %vm472_vm3, %v1025_v10  ;;  %2256 = vmatmul.mubr.msk.f32.gmra.mxu0 %vm472_vm3, %v1036_v22 }
 0x166   : > { %1417 = vmatprep.mubr.f32.mxu1 %v3354_v21  ;;  %1603 = vmatprep.mubr.f32.mxu0 %v3354_v21 }
 0x167   : > { %2311 = vmatpush3.msra.mxu1 %v1744_v43 }
 0x168   : > { %2312 = vmatprep.subr.mxu1 %v1759_v60 }
 0x169   : > { %2244 = vmatmul.mubr.msk.f32.gmra.mxu1 %vm472_vm3, %v1026_v11  ;;  %2257 = vmatmul.mubr.msk.f32.gmra.mxu0 %vm472_vm3, %v1037_v23 }
 0x16a   : > { %1423 = vmatprep.mubr.f32.mxu1 %v3354_v21  ;;  %1609 = vmatprep.mubr.f32.mxu0 %v3354_v21 }
 0x16b   : > { %2313 = vmatpush3.msra.mxu1 %v1743_v62 }
 0x16c   : > { %2314 = vmatprep.subr.mxu1 %v1758_v55 }
 0x16d   : > { %2245 = vmatmul.mubr.msk.f32.gmra.mxu1 %vm472_vm3, %v1027_v12  ;;  %2258 = vmatmul.mubr.msk.f32.gmra.mxu0 %vm472_vm3, %v1038_v25 }
 0x16e   : > { %1615 = vmatprep.mubr.f32.mxu0 %v3354_v21  ;;  %2315 = vmatpush3.msra.mxu1 %v1742_v63 }
 0x171   : > { %2259 = vmatmul.mubr.msk.f32.gmra.mxu0 %vm472_vm3, %v1039_v24 }
 0x172   : > { %1621 = vmatprep.mubr.f32.mxu0 %v3354_v21 }
 0x175   : > { %2260 = vmatmul.mubr.msk.f32.gmra.mxu0 %vm472_vm3, %v1040_v31 }
 0x176   : > { %1627 = vmatprep.mubr.f32.mxu0 %v3354_v21 }
 0x179   : > { %2261 = vmatmul.mubr.msk.f32.gmra.mxu0 %vm472_vm3, %v1041_v37 }
 0x17a   : > { %1633 = vmatprep.mubr.f32.mxu0 %v3354_v21 }
 0x17d   : > { %2262 = vmatmul.mubr.msk.f32.gmra.mxu0 %vm472_vm3, %v1042_v39 }
 0x17e   : > { %1639 = vmatprep.mubr.f32.mxu0 %v3354_v21 }
 0x181   : > { %2263 = vmatmul.mubr.msk.f32.gmra.mxu0 %vm472_vm3, %v1043_v49 }
 0x1b9   : > { %v3089_v0 = vpop.f32.mrf.mxu0 }
 0x1bb   : > { %v3091_v2 = vpop.f32.mrf.mxu0  ;;  %v3093_v50 = vpop.f32.mrf.mxu1 }
 0x1bd   : > { %v3095_v3 = vpop.f32.mrf.mxu0  ;;  %v3097_v4 = vpop.f32.mrf.mxu1 }
 0x1bf   : > { %v3099_v1 = vpop.f32.mrf.mxu0 }
 0x1c1   : > { %v3101_v5 = vpop.f32.mrf.mxu0  ;;  %v3103_v6 = vpop.f32.mrf.mxu1 }
 0x1c3   : > { %v3105_v61 = vpop.f32.mrf.mxu0  ;;  %v3107_v7 = vpop.f32.mrf.mxu1 }
 0x1c5   : > { %v3109_v8 = vpop.f32.mrf.mxu1  ;;  %v3111_v9 = vpop.f32.mrf.mxu0 }
 0x1c7   : > { %v3113_v10 = vpop.f32.mrf.mxu1  ;;  %v3115_v11 = vpop.f32.mrf.mxu0 }
 0x1c9   : > { %v3117_v12 = vpop.f32.mrf.mxu1  ;;  %v3119_v13 = vpop.f32.mrf.mxu0 }
 0x1cb   : > { %v3128_v15 = vpop.f32.mrf.mxu1  ;;  %v3130_v16 = vpop.f32.mrf.mxu0 }
 0x1cd   : > { %v3132_v17 = vpop.f32.mrf.mxu1  ;;  %v3134_v18 = vpop.f32.mrf.mxu0 }
 0x1cf   : > { %v3136_v19 = vpop.f32.mrf.mxu1  ;;  %v3138_v20 = vpop.f32.mrf.mxu0 }
 0x1d1   : > { %v3140_v22 = vpop.f32.mrf.mxu1  ;;  %v3142_v23 = vpop.f32.mrf.mxu0 }
 0x1d3   : > { %v3144_v25 = vpop.f32.mrf.mxu1  ;;  %v3146_v26 = vpop.f32.mrf.mxu0 }
 0x1d5   : > { %v3148_v27 = vpop.f32.mrf.mxu1  ;;  %v3150_v24 = vpop.f32.mrf.mxu0 }
 0x1d6   : > { %3356 = vst [vmem:[#allocation2_spill] sm:$0xff] %v3148_v27 }
 0x1d7   : > { %v3152_v28 = vpop.f32.mrf.mxu1  ;;  %v3154_v29 = vpop.f32.mrf.mxu0 }
 0x1d8   : > { %3357 = vst [vmem:[#allocation3_spill] sm:$0xff] %v3152_v28 }
 0x1d9   : > { %v3156_v30 = vpop.f32.mrf.mxu1  ;;  %v3158_v31 = vpop.f32.mrf.mxu0 }
 0x1da   : > { %3358 = vst [vmem:[#allocation4_spill] sm:$0xff] %v3156_v30 }
 0x1db   : > { %v3160_v32 = vpop.f32.mrf.mxu1  ;;  %v3162_v33 = vpop.f32.mrf.mxu0 }
 0x1dc   : > { %3359 = vst [vmem:[#allocation5_spill] sm:$0xff] %v3160_v32 }
 0x1dd   : > { %v3164_v35 = vpop.f32.mrf.mxu1  ;;  %v3166_v36 = vpop.f32.mrf.mxu0 }
 0x1de   : > { %3360 = vst [vmem:[#allocation6_spill] sm:$0xff] %v3164_v35 }
 0x1df   : > { %v3168_v37 = vpop.f32.mrf.mxu1  ;;  %v3170_v34 = vpop.f32.mrf.mxu0 }
 0x1e0   : > { %3361 = vst [vmem:[#allocation7_spill] sm:$0xff] %v3168_v37 }
 0x1e1   : > { %v3172_v40 = vpop.f32.mrf.mxu1  ;;  %v3174_v41 = vpop.f32.mrf.mxu0 }
 0x1e2   : > { %3362 = vst [vmem:[#allocation8_spill] sm:$0xff] %v3172_v40 }
 0x1e3   : > { %v3176_v42 = vpop.f32.mrf.mxu1  ;;  %v3178_v39 = vpop.f32.mrf.mxu0 }
 0x1e4   : > { %3363 = vst [vmem:[#allocation9_spill] sm:$0xff] %v3176_v42 }
 0x1e5   : > { %v3180_v44 = vpop.f32.mrf.mxu1  ;;  %v3182_v45 = vpop.f32.mrf.mxu0 }
 0x1e6   : > { %3364 = vst [vmem:[#allocation10_spill] sm:$0xff] %v3180_v44 }
 0x1e7   : > { %v3184_v47 = vpop.f32.mrf.mxu1  ;;  %v3186_v48 = vpop.f32.mrf.mxu0 }
 0x1e8   : > { %3365 = vst [vmem:[#allocation11_spill] sm:$0xff] %v3184_v47 }
 0x1e9   : > { %v3188_v49 = vpop.f32.mrf.mxu1  ;;  %v3190_v51 = vpop.f32.mrf.mxu0 }
 0x1ea   : > { %3366 = vst [vmem:[#allocation12_spill] sm:$0xff] %v3188_v49 }
 0x1eb   : > { %v3192_v38 = vpop.f32.mrf.mxu1  ;;  %v3194_v52 = vpop.f32.mrf.mxu0 }
 0x1ec   : > { %3367 = vst [vmem:[#allocation13_spill] sm:$0xff] %v3192_v38 }
 0x1ed   : > { %v3196_v53 = vpop.f32.mrf.mxu1  ;;  %v3198_v54 = vpop.f32.mrf.mxu0 }
 0x1ee   : > { %3368 = vst [vmem:[#allocation14_spill] sm:$0xff] %v3196_v53  ;;  %3369 = vst [vmem:[#allocation15_spill] sm:$0xff] %v3198_v54 }
 0x1ef   : > { %v3200_v46 = vpop.f32.mrf.mxu1  ;;  %v3202_v56 = vpop.f32.mrf.mxu0 }
 0x1f0   : > { %3370 = vst [vmem:[#allocation16_spill] sm:$0xff] %v3200_v46  ;;  %3371 = vst [vmem:[#allocation17_spill] sm:$0xff] %v3202_v56 }
 0x1f1   : > { %v3204_v57 = vpop.f32.mrf.mxu0  ;;  %v1335_v58 = vpop.f32.mrf.mxu1 }
 0x1f2   : > { %3372 = vst [vmem:[#allocation18_spill] sm:$0xff] %v3204_v57 }
 0x1f3   : > { %v3206_v59 = vpop.f32.mrf.mxu0  ;;  %v1337_v43 = vpop.f32.mrf.mxu1 }
 0x1f4   : > { %3373 = vst [vmem:[#allocation19_spill] sm:$0xff] %v3206_v59  ;;  %v1647_v30 = vmul.f32 %v1337_v43, %v3115_v11 }
 0x1f5   : > { %v3208_v60 = vpop.f32.mrf.mxu0  ;;  %v1341_v62 = vpop.f32.mrf.mxu1 }
 0x1f6   : > { %3374 = vst [vmem:[#allocation20_spill] sm:$0xff] %v3208_v60  ;;  %v1648_v57 = vmul.f32 %v1341_v62, %v3119_v13 }
 0x1f7   : > { %v3210_v55 = vpop.f32.mrf.mxu0  ;;  %v1343_v63 = vpop.f32.mrf.mxu1 }
 0x1f8   : > { %3375 = vst [vmem:[#allocation21_spill] sm:$0xff] %v3210_v55  ;;  %v1646_v55 = vmul.f32 %v1335_v58, %v3111_v9 }
 0x1f9   : > { %v3212_v14 = vpop.f32.mrf.mxu0  ;;  %v1347_v21 = vpop.f32.mrf.mxu1 }
 0x1fa   : > { %3376 = vst [vmem:[#allocation22_spill] sm:$0xff] %v3212_v14  ;;  %v1650_v11 = vmul.f32 %v1347_v21, %v3134_v18 }
 0x1fb   : > { %v3214_v53 = vpop.f32.mrf.mxu0  ;;  %v1349_v46 = vpop.f32.mrf.mxu1 }
 0x1fc   : > { %3377 = vst [vmem:[#allocation23_spill] sm:$0xff] %v3214_v53  ;;  %v1651_v13 = vmul.f32 %v1349_v46, %v3138_v20 }
 0x1fd   : > { %v3216_v49 = vpop.f32.mrf.mxu0  ;;  %v1353_v38 = vpop.f32.mrf.mxu1 }
 0x1fe   : > { %3378 = vst [vmem:[#allocation24_spill] sm:$0xff] %v3216_v49 }
 0x1ff   : > { %v3218_v44 = vpop.f32.mrf.mxu0  ;;  %v1355_v47 = vpop.f32.mrf.mxu1 }
 0x200   : > { %3379 = vst [vmem:[#allocation25_spill] sm:$0xff] %v3218_v44  ;;  %v1653_v21 = vmul.f32 %v1355_v47, %v3146_v26 }
 0x201   : > { %v3220_v40 = vpop.f32.mrf.mxu0  ;;  %v1359_v42 = vpop.f32.mrf.mxu1 }
 0x202   : > { %3380 = vst [vmem:[#allocation26_spill] sm:$0xff] %v3220_v40  ;;  %v1649_v40 = vmul.f32 %v1343_v63, %v3130_v16 }
 0x203   : > { %v3222_v35 = vpop.f32.mrf.mxu0  ;;  %v1361_v37 = vpop.f32.mrf.mxu1 }
 0x204   : > { %3381 = vst [vmem:[#allocation27_spill] sm:$0xff] %v3222_v35 }
 0x205   : > { %v1365_v60 = vpop.f32.mrf.mxu1  ;;  %v1551_v14 = vpop.f32.mrf.mxu0 }
 0x206   : > { %v1678_v53 = vmul.f32 %v1646_v55, %v1551_v14  ;;  %v1656_v62 = vmul.f32 %v1365_v60, %v3158_v31 }
 0x207   : > { %v1367_v32 = vpop.f32.mrf.mxu1  ;;  %v1553_v59 = vpop.f32.mrf.mxu0 }
 0x208   : > { %v1679_v49 = vmul.f32 %v1647_v30, %v1553_v59  ;;  %v1710_v35 = vmul.f32 %v1678_v53, %v3089_v0 }
 0x209   : > { %v1371_v44 = vpop.f32.mrf.mxu1  ;;  %v1557_v27 = vpop.f32.mrf.mxu0 }
 0x20a   : > { %v1711_v28 = vmul.f32 %v1679_v49, %v3091_v2  ;;  %v1680_v56 = vmul.f32 %v1648_v57, %v1557_v27  ;;  %v1652_v27 = vmul.f32 %v1353_v38, %v3142_v23  ;;  %v1655_v23 = vmul.f32 %v1361_v37, %v3154_v29 }
 0x20b   : > { %v1373_v9 = vpop.f32.mrf.mxu1  ;;  %v1559_v58 = vpop.f32.mrf.mxu0 }
 0x20c   : > { %v1681_v54 = vmul.f32 %v1649_v40, %v1559_v58  ;;  %1838 = vmatprep.mubr.f32.mxu1 %v1711_v28  ;;  %v1712_v16 = vmul.f32 %v1680_v56, %v3095_v3  ;;  %v1659_v31 = vmul.f32 %v1373_v9, %v3170_v34 }
 0x20d   : > { %v1377_v43 = vpop.f32.mrf.mxu1  ;;  %v1563_v55 = vpop.f32.mrf.mxu0  ;;  %1839 = vmatmul.mubr.f32.vlgmr.msra.gmra.mxu1 %v1710_v35 }
 0x20e   : > { %v1713_v30 = vmul.f32 %v1681_v54, %v3099_v1  ;;  %v1682_v59 = vmul.f32 %v1650_v11, %v1563_v55  ;;  %v1654_v54 = vmul.f32 %v1359_v42, %v3150_v24  ;;  %v1657_v24 = vmul.f32 %v1367_v32, %v3162_v33 }
 0x20f   : > { %v1379_v2 = vpop.f32.mrf.mxu1  ;;  %v1565_v49 = vpop.f32.mrf.mxu0  ;;  %v1658_v11 = vmul.f32 %v1371_v44, %v3166_v36 }
 0x210   : > { %v1683_v0 = vmul.f32 %v1651_v13, %v1565_v49  ;;  %1843 = vmatprep.mubr.f32.mxu1 %v1713_v30  ;;  %v1714_v20 = vmul.f32 %v1682_v59, %v3101_v5  ;;  %v1661_v36 = vmul.f32 %v1379_v2, %v3178_v39 }
 0x211   : > { %v1383_v40 = vpop.f32.mrf.mxu1  ;;  %v1569_v28 = vpop.f32.mrf.mxu0  ;;  %1844 = vmatmul.mubr.f32.gmra.mxu1 %v1712_v16  ;;  %v1660_v16 = vmul.f32 %v1377_v43, %v3174_v41 }
 0x212   : > { %v1715_v18 = vmul.f32 %v1683_v0, %v3105_v61  ;;  %v1684_v35 = vmul.f32 %v1652_v27, %v1569_v28 }
 0x213   : > { %v1385_v1 = vpop.f32.mrf.mxu1  ;;  %v1571_v53 = vpop.f32.mrf.mxu0 }
 0x214   : > { %v1685_v3 = vmul.f32 %v1653_v21, %v1571_v53  ;;  %1848 = vmatprep.mubr.f32.mxu1 %v1715_v18  ;;  %v1716_v26 = vmul.f32 %v1684_v35, %v3093_v50  ;;  %v1663_v28 = vmul.f32 %v1385_v1, %v3186_v48 }
 0x215   : > { %v1389_v46 = vpop.f32.mrf.mxu1  ;;  %v1575_v56 = vpop.f32.mrf.mxu0  ;;  %1849 = vmatmul.mubr.f32.gmra.mxu1 %v1714_v20 }
 0x216   : > { %v1717_v38 = vmul.f32 %v1685_v3, %v3097_v4  ;;  %v1686_v47 = vmul.f32 %v1654_v54, %v1575_v56  ;;  %v3383_v54 = vld [vmem:[#allocation17_spill] sm:$0xff] }
 0x217   : > { %v1391_v61 = vpop.f32.mrf.mxu1  ;;  %v1577_v57 = vpop.f32.mrf.mxu0 }
 0x218   : > { %v1687_v5 = vmul.f32 %v1655_v23, %v1577_v57  ;;  %1853 = vmatprep.mubr.f32.mxu1 %v1717_v38  ;;  %v1718_v29 = vmul.f32 %v1686_v47, %v3103_v6  ;;  %v1665_v20 = vmul.f32 %v1391_v61, %v3194_v52  ;;  %v3385_v52 = vld [vmem:[#allocation2_spill] sm:$0xff] }
 0x219   : > { %v1395_v63 = vpop.f32.mrf.mxu1  ;;  %v1581_v14 = vpop.f32.mrf.mxu0  ;;  %1854 = vmatmul.mubr.f32.gmra.mxu1 %v1716_v26 }
 0x21a   : > { %v1719_v42 = vmul.f32 %v1687_v5, %v3107_v7  ;;  %v1688_v37 = vmul.f32 %v1656_v62, %v1581_v14  ;;  %v1922_v5 = vld [vmem:[%s3125_s22 + $0x8] sm:$0xff]  ;;  %v3388_v14 = vld [vmem:[#allocation5_spill] sm:$0xff] }
 0x21b   : > { %v1397_v4 = vpop.f32.mrf.mxu1  ;;  %v1583_v58 = vpop.f32.mrf.mxu0  ;;  %v3387_v62 = vld [vmem:[#allocation19_spill] sm:$0xff]  ;;  %1938 = vxpose.xlu0.b32.cont [2/16] (narrow) %v1922_v5, 16 }
 0x21c   : > { %v1689_v50 = vmul.f32 %v1657_v24, %v1583_v58  ;;  %1858 = vmatprep.mubr.f32.mxu1 %v1719_v42  ;;  %v1720_v32 = vmul.f32 %v1688_v37, %v3109_v8  ;;  %v1662_v8 = vmul.f32 %v1383_v40, %v3182_v45 }
 0x21d   : > { %v1401_v55 = vpop.f32.mrf.mxu1  ;;  %v1587_v13 = vpop.f32.mrf.mxu0  ;;  %1859 = vmatmul.mubr.f32.gmra.mxu1 %v1718_v29  ;;  %v3389_v29 = vld [vmem:[#allocation4_spill] sm:$0xff] }
 0x21e   : > { %v1721_v60 = vmul.f32 %v1689_v50, %v3113_v10  ;;  %v1690_v33 = vmul.f32 %v1658_v11, %v1587_v13  ;;  %v3390_v11 = vld [vmem:[#allocation20_spill] sm:$0xff] }
 0x21f   : > { %v1403_v7 = vpop.f32.mrf.mxu1  ;;  %v1589_v30 = vpop.f32.mrf.mxu0 }
 0x220   : > { %v1691_v6 = vmul.f32 %v1659_v31, %v1589_v30  ;;  %1863 = vmatprep.mubr.f32.mxu1 %v1721_v60  ;;  %v1722_v49 = vmul.f32 %v1690_v33, %v3117_v12  ;;  %v1664_v12 = vmul.f32 %v1389_v46, %v3190_v51  ;;  %v1667_v51 = vmul.f32 %v1397_v4, %v3383_v54  ;;  %v3384_v46 = vld [vmem:[#allocation3_spill] sm:$0xff]  ;;  %v1923_v31 = vld [vmem:[%s3125_s22 + $0x10] sm:$0xff]  ;;  %v3391_v60 = vld [vmem:[#allocation21_spill] sm:$0xff] }
 0x221   : > { %v1593_v59 = vpop.f32.mrf.mxu0  ;;  %1864 = vmatmul.mubr.f32.gmra.mxu1 %v1720_v32  ;;  %v1407_v34 = vpop.f32.mrf.mxu1  ;;  %v3392_v33 = vld [vmem:[#allocation7_spill] sm:$0xff]  ;;  %1939 = vxpose.xlu0.b32.cont [3/16] (narrow) %v1923_v31, 16  ;;  %v1935_v31 = vld [vmem:[%s3125_s22 + $0x70] sm:$0xff] }
 0x222   : > { %v1723_v44 = vmul.f32 %v1691_v6, %v3128_v15  ;;  %v1692_v9 = vmul.f32 %v1660_v16, %v1593_v59  ;;  %v1670_v13 = vmul.f32 %v1407_v34, %v3390_v11  ;;  %v3393_v6 = vld [vmem:[#allocation6_spill] sm:$0xff]  ;;  %v1932_v11 = vld [vmem:[%s3125_s22 + $0x58] sm:$0xff] }
 0x223   : > { %v1595_v10 = vpop.f32.mrf.mxu0  ;;  %v1409_v39 = vpop.f32.mrf.mxu1 }
 0x224   : > { %v1693_v0 = vmul.f32 %v1661_v36, %v1595_v10  ;;  %1868 = vmatprep.mubr.f32.mxu1 %v1723_v44  ;;  %v1724_v43 = vmul.f32 %v1692_v9, %v3132_v17  ;;  %v3382_v17 = vld [vmem:[#allocation15_spill] sm:$0xff]  ;;  %v1671_v32 = vmul.f32 %v1409_v39, %v3391_v60  ;;  %v1924_v10 = vld [vmem:[%s3125_s22 + $0x18] sm:$0xff] }
 0x225   : > { %v1599_v27 = vpop.f32.mrf.mxu0  ;;  %1869 = vmatmul.mubr.f32.gmra.mxu1 %v1722_v49  ;;  %v1413_v40 = vpop.f32.mrf.mxu1  ;;  %v1666_v53 = vmul.f32 %v1395_v63, %v3382_v17  ;;  %v1669_v63 = vmul.f32 %v1403_v7, %v3387_v62  ;;  %v3394_v49 = vld [vmem:[#allocation22_spill] sm:$0xff]  ;;  %1940 = vxpose.xlu0.b32.cont [4/16] (narrow) %v1924_v10, 16  ;;  %v1936_v60 = vld [vmem:[%s3125_s22 + $0x78] sm:$0xff] }
 0x226   : > { %v1725_v41 = vmul.f32 %v1693_v0, %v3136_v19  ;;  %v1694_v2 = vmul.f32 %v1662_v8, %v1599_v27  ;;  %v1672_v9 = vmul.f32 %v1413_v40, %v3394_v49  ;;  %v3395_v0 = vld [vmem:[#allocation23_spill] sm:$0xff]  ;;  %v3396_v27 = vld [vmem:[#allocation9_spill] sm:$0xff]  ;;  %v3401_v17 = vld [vmem:[#allocation10_spill] sm:$0xff] }
 0x227   : > { %v1601_v15 = vpop.f32.mrf.mxu0  ;;  %v1415_v23 = vpop.f32.mrf.mxu1  ;;  %v3399_v40 = vld [vmem:[#allocation25_spill] sm:$0xff] }
 0x228   : > { %v1695_v21 = vmul.f32 %v1663_v28, %v1601_v15  ;;  %1873 = vmatprep.mubr.f32.mxu1 %v1725_v41  ;;  %v1726_v48 = vmul.f32 %v1694_v2, %v3140_v22  ;;  %v3386_v22 = vld [vmem:[#allocation18_spill] sm:$0xff]  ;;  %v1673_v8 = vmul.f32 %v1415_v23, %v3395_v0 }
 0x229   : > { %v1605_v18 = vpop.f32.mrf.mxu0  ;;  %1874 = vmatmul.mubr.f32.gmra.mxu1 %v1724_v43  ;;  %v1668_v61 = vmul.f32 %v1401_v55, %v3386_v22  ;;  %v1419_v42 = vpop.f32.mrf.mxu1  ;;  %v3397_v43 = vld [vmem:[#allocation8_spill] sm:$0xff] }
 0x22a   : > { %v1727_v45 = vmul.f32 %v1695_v21, %v3144_v25  ;;  %v1696_v35 = vmul.f32 %v1664_v12, %v1605_v18  ;;  %v3398_v12 = vld [vmem:[#allocation24_spill] sm:$0xff] }
 0x22b   : > { %v1607_v19 = vpop.f32.mrf.mxu0  ;;  %v1421_v30 = vpop.f32.mrf.mxu1  ;;  %v1674_v18 = vmul.f32 %v1419_v42, %v3398_v12  ;;  %v3405_v22 = vld [vmem:[#allocation12_spill] sm:$0xff]  ;;  %v3407_v42 = vld [vmem:[#allocation14_spill] sm:$0xff] }
 0x22c   : > { %v1697_v1 = vmul.f32 %v1665_v20, %v1607_v19  ;;  %1878 = vmatprep.mubr.f32.mxu1 %v1727_v45  ;;  %v1728_v38 = vmul.f32 %v1696_v35, %v3385_v52  ;;  %v1925_v45 = vld [vmem:[%s3125_s22 + $0x20] sm:$0xff]  ;;  %v3400_v35 = vld [vmem:[#allocation11_spill] sm:$0xff] }
 0x22d   : > { %v1611_v3 = vpop.f32.mrf.mxu0  ;;  %1879 = vmatmul.mubr.f32.gmra.mxu1 %v1726_v48  ;;  %v1425_v41 = vpop.f32.mrf.mxu1  ;;  %v1675_v48 = vmul.f32 %v1421_v30, %v3399_v40  ;;  %1941 = vxpose.xlu0.b32.cont [5/16] (narrow) %v1925_v45, 16  ;;  %v1926_v52 = vld [vmem:[%s3125_s22 + $0x28] sm:$0xff] }
 0x22e   : > { %v1729_v56 = vmul.f32 %v1697_v1, %v3384_v46  ;;  %v1698_v25 = vmul.f32 %v1666_v53, %v1611_v3  ;;  %v3402_v46 = vld [vmem:[#allocation26_spill] sm:$0xff] }
 0x22f   : > { %v1613_v26 = vpop.f32.mrf.mxu0  ;;  %v1427_v1 = vpop.f32.mrf.mxu1 }
 0x230   : > { %v1699_v47 = vmul.f32 %v1667_v51, %v1613_v26  ;;  %1883 = vmatprep.mubr.f32.mxu1 %v1729_v56  ;;  %v1730_v37 = vmul.f32 %v1698_v25, %v3389_v29  ;;  %v1676_v56 = vmul.f32 %v1425_v41, %v3402_v46  ;;  %v3404_v26 = vld [vmem:[#allocation13_spill] sm:$0xff] }
 0x231   : > { %v1617_v57 = vpop.f32.mrf.mxu0  ;;  %1884 = vmatmul.mubr.f32.gmra.mxu1 %v1728_v38  ;;  %v3403_v38 = vld [vmem:[#allocation27_spill] sm:$0xff]  ;;  %1942 = vxpose.xlu0.b32.cont [6/16] (narrow) %v1926_v52, 16 }
 0x232   : > { %v1731_v24 = vmul.f32 %v1699_v47, %v3388_v14  ;;  %v1700_v4 = vmul.f32 %v1668_v61, %v1617_v57  ;;  %v1677_v25 = vmul.f32 %v1427_v1, %v3403_v38  ;;  %v3406_v14 = vld [vmem:[#allocation16_spill] sm:$0xff] }
 0x233   : > { %v1619_v58 = vpop.f32.mrf.mxu0 }
 0x234   : > { %v1701_v50 = vmul.f32 %v1669_v63, %v1619_v58  ;;  %1888 = vmatprep.mubr.f32.mxu1 %v1731_v24  ;;  %v1732_v16 = vmul.f32 %v1700_v4, %v3393_v6  ;;  %v1927_v63 = vld [vmem:[%s3125_s22 + $0x30] sm:$0xff]  ;;  %v1929_v4 = vld [vmem:[%s3125_s22 + $0x40] sm:$0xff]  ;;  %v1930_v58 = vld [vmem:[%s3125_s22 + $0x48] sm:$0xff] }
 0x235   : > { %v1623_v55 = vpop.f32.mrf.mxu0  ;;  %1889 = vmatmul.mubr.f32.gmra.mxu1 %v1730_v37  ;;  %1943 = vxpose.xlu0.b32.cont [7/16] (narrow) %v1927_v63, 16  ;;  %v1928_v37 = vld [vmem:[%s3125_s22 + $0x38] sm:$0xff] }
 0x236   : > { %v1733_v7 = vmul.f32 %v1701_v50, %v3392_v33  ;;  %v1702_v59 = vmul.f32 %v1670_v13, %v1623_v55  ;;  %v1931_v50 = vld [vmem:[%s3125_s22 + $0x50] sm:$0xff]  ;;  %v1933_v13 = vld [vmem:[%s3125_s22 + $0x60] sm:$0xff]  ;;  %v1934_v55 = vld [vmem:[%s3125_s22 + $0x68] sm:$0xff]  ;;  %v3408_v33 = vmov 0.0  }
 0x237   : > { %v1625_v36 = vpop.f32.mrf.mxu0  ;;  %474 = vst.msk [vmem:[%s3308_s25 + $0x8] sm:$0xff] %vm472_vm3, %v3408_v33  ;;  %473 = vst.msk [vmem:[%s3308_s25] sm:$0xff] %vm472_vm3, %v3408_v33 }
 0x238   : > { %v1703_v44 = vmul.f32 %v1671_v32, %v1625_v36  ;;  %1893 = vmatprep.mubr.f32.mxu1 %v1733_v7  ;;  %v1734_v39 = vmul.f32 %v1702_v59, %v3397_v43 }
 0x239   : > { %v1629_v34 = vpop.f32.mrf.mxu0  ;;  %1894 = vmatmul.mubr.f32.gmra.mxu1 %v1732_v16  ;;  %1944 = vxpose.xlu0.b32.cont [8/16] (narrow) %v1928_v37, 16 }
 0x23a   : > { %v1735_v28 = vmul.f32 %v1703_v44, %v3396_v27  ;;  %v1704_v2 = vmul.f32 %v1672_v9, %v1629_v34 }
 0x23b   : > { %v1631_v15 = vpop.f32.mrf.mxu0 }
 0x23c   : > { %v1705_v21 = vmul.f32 %v1673_v8, %v1631_v15  ;;  %1898 = vmatprep.mubr.f32.mxu1 %v1735_v28  ;;  %v1736_v53 = vmul.f32 %v1704_v2, %v3401_v17 }
 0x23d   : > { %v1635_v20 = vpop.f32.mrf.mxu0  ;;  %1899 = vmatmul.mubr.f32.gmra.mxu1 %v1734_v39  ;;  %1945 = vxpose.xlu0.b32.cont [9/16] (narrow) %v1929_v4, 16 }
 0x23e   : > { %v1737_v19 = vmul.f32 %v1705_v21, %v3400_v35  ;;  %v1706_v3 = vmul.f32 %v1674_v18, %v1635_v20 }
 0x23f   : > { %v1637_v54 = vpop.f32.mrf.mxu0 }
 0x240   : > { %v1707_v51 = vmul.f32 %v1675_v48, %v1637_v54  ;;  %1903 = vmatprep.mubr.f32.mxu1 %v1737_v19  ;;  %v1738_v61 = vmul.f32 %v1706_v3, %v3405_v22 }
 0x241   : > { %v1641_v23 = vpop.f32.mrf.mxu0  ;;  %1904 = vmatmul.mubr.f32.gmra.mxu1 %v1736_v53  ;;  %1946 = vxpose.xlu0.b32.cont [10/16] (narrow) %v1930_v58, 16 }
 0x242   : > { %v1739_v47 = vmul.f32 %v1707_v51, %v3404_v26  ;;  %v1708_v57 = vmul.f32 %v1676_v56, %v1641_v23 }
 0x243   : > { %v1643_v5 = vpop.f32.mrf.mxu0 }
 0x244   : > { %v1709_v62 = vmul.f32 %v1677_v25, %v1643_v5  ;;  %1908 = vmatprep.mubr.f32.mxu1 %v1739_v47  ;;  %v1740_v29 = vmul.f32 %v1708_v57, %v3407_v42  ;;  %v1919_v42 = vld [vmem:[%s3308_s25] sm:$0xff] }
 0x245   : > { %1909 = vmatmul.mubr.f32.gmra.mxu1 %v1738_v61  ;;  %1947 = vxpose.xlu0.b32.cont [11/16] (narrow) %v1931_v50, 16 }
 0x246   : > { %v1741_v24 = vmul.f32 %v1709_v62, %v3406_v14  ;;  %v1920_v14 = vld [vmem:[%s3308_s25 + $0x8] sm:$0xff] }
 0x248   : > { %1913 = vmatprep.mubr.f32.mxu1 %v1741_v24 }
 0x249   : > { %1914 = vmatmul.mubr.f32.gmra.mxu1 %v1740_v29  ;;  %1948 = vxpose.xlu0.b32.cont [12/16] (narrow) %v1932_v11, 16 }
 0x24d   : > { %1949 = vxpose.xlu0.b32.cont [13/16] (narrow) %v1933_v13, 16 }
 0x251   : > { %1950 = vxpose.xlu0.b32.cont [14/16] (narrow) %v1934_v55, 16 }
 0x255   : > { %1951 = vxpose.xlu0.b32.cont [15/16] (narrow) %v1935_v31, 16 }
 0x259   : > { %1952 = vxpose.xlu0.b32.end [16/16] (narrow) %v1936_v60, 16 }
 0x299   : > { %v1953_v32 = vpop.trf.xlu0 }
 0x29a   : > { %2440 = vmatprep.mubr.f32.mxu0 %v1953_v32 }
 0x29d   : > { %v1954_v63 = vpop.trf.xlu0 }
 0x2cd   : > { %v2316_v7 = vpop.f32.mrf.mxu1 }
 0x2cf   : > { %v2317_v30 = vpop.f32.mrf.mxu1 }
 0x2d0   : > { %v3316_v6 = vadd.f32 %v2317_v30, %v2316_v7 }
 0x2d1   : > { %v2319_v16 = vpop.f32.mrf.mxu1 }
 0x2d3   : > { %v2320_v59 = vpop.f32.mrf.mxu1 }
 0x2d4   : > { %v3318_v36 = vadd.f32 %v2320_v59, %v2319_v16 }
 0x2d5   : > { %v2322_v44 = vpop.f32.mrf.mxu1 }
 0x2d7   : > { %v2323_v49 = vpop.f32.mrf.mxu1 }
 0x2d8   : > { %v3320_v9 = vadd.f32 %v2323_v49, %v2322_v44 }
 0x2d9   : > { %v2325_v34 = vpop.f32.mrf.mxu1 }
 0x2db   : > { %v2326_v10 = vpop.f32.mrf.mxu1 }
 0x2dc   : > { %v2327_v0 = vadd.f32 %v2326_v10, %v2325_v34 }
 0x2dd   : > { %v2328_v8 = vpop.f32.mrf.mxu1 }
 0x2df   : > { %v2329_v27 = vpop.f32.mrf.mxu1 }
 0x2e0   : > { %v2330_v28 = vadd.f32 %v2329_v27, %v2328_v8 }
 0x2e1   : > { %v2331_v41 = vpop.f32.mrf.mxu1 }
 0x2e3   : > { %v2332_v43 = vpop.f32.mrf.mxu1 }
 0x2e4   : > { %v2333_v62 = vadd.f32 %v2332_v43, %v2331_v41 }
 0x2e5   : > { %v2334_v39 = vpop.f32.mrf.mxu1 }
 0x2e7   : > { %v2335_v2 = vpop.f32.mrf.mxu1 }
 0x2e8   : > { %v2336_v5 = vadd.f32 %v2335_v2, %v2334_v39 }
 0x2e9   : > { %v2337_v15 = vpop.f32.mrf.mxu1 }
 0x2eb   : > { %v2338_v21 = vpop.f32.mrf.mxu1 }
 0x2ec   : > { %v2339_v57 = vadd.f32 %v2338_v21, %v2337_v15 }
 0x2ed   : > { %v2340_v12 = vpop.f32.mrf.mxu1 }
 0x2ef   : > { %v2341_v18 = vpop.f32.mrf.mxu1 }
 0x2f0   : > { %v2342_v61 = vadd.f32 %v2341_v18, %v2340_v12 }
 0x2f1   : > { %v2343_v20 = vpop.f32.mrf.mxu1 }
 0x2f3   : > { %v2344_v45 = vpop.f32.mrf.mxu1 }
 0x2f4   : > { %v2345_v22 = vadd.f32 %v2344_v45, %v2343_v20 }
 0x2f5   : > { %v2346_v40 = vpop.f32.mrf.mxu1 }
 0x2f7   : > { %v2347_v48 = vpop.f32.mrf.mxu1 }
 0x2f8   : > { %v2348_v47 = vadd.f32 %v2347_v48, %v2346_v40 }
 0x2f9   : > { %v2349_v35 = vpop.f32.mrf.mxu1 }
 0x2fb   : > { %v2350_v19 = vpop.f32.mrf.mxu1 }
 0x2fc   : > { %v2351_v26 = vadd.f32 %v2350_v19, %v2349_v35 }
 0x2fd   : > { %v2352_v1 = vpop.f32.mrf.mxu1 }
 0x2ff   : > { %v2353_v17 = vpop.f32.mrf.mxu1 }
 0x300   : > { %v2354_v25 = vadd.f32 %v2353_v17, %v2352_v1 }
 0x301   : > { %v2355_v53 = vpop.f32.mrf.mxu1 }
 0x303   : > { %v2356_v3 = vpop.f32.mrf.mxu1 }
 0x304   : > { %v2357_v38 = vadd.f32 %v2356_v3, %v2355_v53 }
 0x305   : > { %v2358_v54 = vpop.f32.mrf.mxu1 }
 0x307   : > { %v2359_v51 = vpop.f32.mrf.mxu1 }
 0x308   : > { %v2360_v52 = vadd.f32 %v2359_v51, %v2358_v54 }
 0x309   : > { %v2361_v46 = vpop.f32.mrf.mxu1 }
 0x30b   : > { %v2362_v56 = vpop.f32.mrf.mxu1 }
 0x30c   : > { %v2363_v23 = vadd.f32 %v2362_v56, %v2361_v46 }
 0x30e   : > { %2408 = vmatprep.subr.mxu0 %v2363_v23 }
 0x30f   : > { %2409 = vmatpush3.msra.mxu0 %v2363_v23 }
 0x310   : > { %2410 = vmatprep.subr.mxu0 %v2360_v52 }
 0x311   : > { %2411 = vmatpush3.msra.mxu0 %v2360_v52 }
 0x312   : > { %2412 = vmatprep.subr.mxu0 %v2357_v38 }
 0x313   : > { %2413 = vmatpush3.msra.mxu0 %v2357_v38 }
 0x314   : > { %2414 = vmatprep.subr.mxu0 %v2354_v25 }
 0x315   : > { %2415 = vmatpush3.msra.mxu0 %v2354_v25 }
 0x316   : > { %2416 = vmatprep.subr.mxu0 %v2351_v26 }
 0x317   : > { %2417 = vmatpush3.msra.mxu0 %v2351_v26 }
 0x318   : > { %2418 = vmatprep.subr.mxu0 %v2348_v47 }
 0x319   : > { %2419 = vmatpush3.msra.mxu0 %v2348_v47 }
 0x31a   : > { %2420 = vmatprep.subr.mxu0 %v2345_v22 }
 0x31b   : > { %2421 = vmatpush3.msra.mxu0 %v2345_v22 }
 0x31c   : > { %2422 = vmatprep.subr.mxu0 %v2342_v61 }
 0x31d   : > { %2423 = vmatpush3.msra.mxu0 %v2342_v61 }
 0x31e   : > { %2424 = vmatprep.subr.mxu0 %v2339_v57 }
 0x31f   : > { %2425 = vmatpush3.msra.mxu0 %v2339_v57 }
 0x320   : > { %2426 = vmatprep.subr.mxu0 %v2336_v5 }
 0x321   : > { %2427 = vmatpush3.msra.mxu0 %v2336_v5 }
 0x322   : > { %2428 = vmatprep.subr.mxu0 %v2333_v62 }
 0x323   : > { %2429 = vmatpush3.msra.mxu0 %v2333_v62 }
 0x324   : > { %2430 = vmatprep.subr.mxu0 %v2330_v28 }
 0x325   : > { %2431 = vmatpush3.msra.mxu0 %v2330_v28 }
 0x326   : > { %2432 = vmatprep.subr.mxu0 %v2327_v0 }
 0x327   : > { %2433 = vmatpush3.msra.mxu0 %v2327_v0 }
 0x328   : > { %2434 = vmatprep.subr.mxu0 %v3320_v9 }
 0x329   : > { %2435 = vmatpush3.msra.mxu0 %v3320_v9 }
 0x32a   : > { %2436 = vmatprep.subr.mxu0 %v3318_v36 }
 0x32b   : > { %2437 = vmatpush3.msra.mxu0 %v3318_v36 }
 0x32c   : > { %2438 = vmatprep.subr.mxu0 %v3316_v6 }
 0x32d   : > { %2439 = vmatpush3.msra.mxu0 %v3316_v6 }
 0x32e   : > { %2441 = vmatmul.mubr.f32.vlgmr.msra.gmra.mxu0 %v1954_v63 }
 0x3ee   : > { %v2442_v24 = vpop.f32.mrf.mxu0 }
 0x3ef   : > { %v2045_v29 = vadd.f32 %v2442_v24, %v1920_v14 }
 0x3f0   : > { %v2035_v37 = vpop.f32.mrf.mxu0 }
 0x3f1   : > { %2047 = vst.msk [vmem:[%s3308_s25 + $0x8] sm:$0xff] %vm472_vm3, %v2045_v29  ;;  %v2044_v4 = vadd.f32 %v2035_v37, %v1919_v42 }
 0x3f3   : > { %2046 = vst.msk [vmem:[%s3308_s25] sm:$0xff] %vm472_vm3, %v2044_v4 }
 0x3f4 PF: > { %s20_s15 = sadd.s32 1, %s2561_s15   ;;  %s3409_s13 = smov %s2557_s14 }
 0x3f5   : > { %p17_p6 = scmp.ge.s32.totalorder %s20_s15, 4   ;;  %s3410_s14 = smov %s3412_s16 }
 0x3f7   :  { %19 = sbr.rel (!%p17_p6) target bundleno = 2 (0x2), region = 103 }

</bundles_post_ra>
